<compile_context>
chip_gen: v6e
topology: v6e:2x2x1
jax: 0.10.0
libtpu: 0.0.40
codegen_flags: <defaults>
</compile_context>

<pallas_src>
import functools

import jax
import jax.numpy as jnp
from jax.experimental import pallas as pl
from jax.experimental.pallas import tpu as pltpu

EPS = 1e-8


def _conv2dmod_kernel(x_ref, y_ref, w_ref, o_ref, acc_ref, *,
                      C, O, H, W, K, tile_h, demod, mxu_dtype):
    # x_ref  : (1, Hp, Wp, C)    padded NHWC input, resident across spatial tiles
    # y_ref  : (1, 1, C)         style vector for this batch element
    # w_ref  : (K*K, C, O)       shared base weight in (tap, in, out) layout
    # o_ref  : (1, tile_h*W, O)  output slab: image rows [s*tile_h, (s+1)*tile_h)
    # acc_ref: (tile_h*W, O)     f32 VMEM accumulator scratch
    s = pl.program_id(1)
    row0 = s * tile_h

    # Modulation factor (y + 1), per input channel (sublane axis of (C, O)).
    ym = y_ref[0, 0, :].astype(jnp.float32)[:, None] + 1.0            # (C, 1)

    # Demodulation: rsqrt of sum over (in, kh, kw) of the modulated weight
    # squared, accumulated tap-by-tap so the full f32 modulated weight
    # (K*K, C, O) is never materialized.
    if demod:
        denom = jnp.zeros((1, O), jnp.float32)
        for t in range(K * K):
            wt = w_ref[t].astype(jnp.float32) * ym                    # (C, O)
            denom = denom + jnp.sum(wt * wt, axis=0, keepdims=True)
        d = jax.lax.rsqrt(denom + EPS)                                # (1, O)
    else:
        d = jnp.ones((1, O), jnp.float32)

    acc_ref[...] = jnp.zeros_like(acc_ref)

    # Convolution as K*K shifted MXU matmuls: (tile_h*W, C) x (C, O).
    # bf16 operands, f32 accumulation into the VMEM scratch.
    for ki in range(K):
        for kj in range(K):
            t = ki * K + kj
            w_tap = (w_ref[t].astype(jnp.float32) * ym * d).astype(mxu_dtype)
            x_tap = x_ref[0, pl.ds(row0 + ki, tile_h), kj:kj + W, :]  # (tile_h, W, C)
            x_tap = x_tap.reshape(tile_h * W, C).astype(mxu_dtype)
            acc_ref[...] += jax.lax.dot_general(
                x_tap, w_tap,
                dimension_numbers=(((1,), (0,)), ((), ())),
                preferred_element_type=jnp.float32)

    o_ref[0] = acc_ref[...].astype(o_ref.dtype)


def _pick_tile_h(H, W):
    # Largest divisor of H whose flattened spatial tile (tile_h*W) keeps the
    # output block sublane-aligned and of a reasonable VMEM size.
    for th in range(H, 0, -1):
        if H % th == 0 and th * W <= 2048 and (th * W) % 8 == 0:
            return th
    return H  # whole image: block equals full dim, always legal


def conv2d_mod(x, y, weight, *, demod=True, stride=1, dilation=1,
               tile_h=None, mxu_dtype=jnp.bfloat16):
    """Pallas Conv2DMod forward.  x: (B,C,H,W), y: (B,C), weight: (O,C,K,K)."""
    # TODO(synk): only stride=1 / dilation=1 supported (the module defaults);
    # the original module's final reshape also assumes output size == (H, W).
    assert stride == 1 and dilation == 1
    B, C, H, W = x.shape
    O, Cw, K, K2 = weight.shape
    assert Cw == C and K == K2 and y.shape == (B, C)
    assert K % 2 == 1, "even kernels need asymmetric 'same' padding"

    pad = ((H - 1) * (stride - 1) + dilation * (K - 1)) // 2   # == (K - 1) // 2
    if tile_h is None:
        tile_h = _pick_tile_h(H, W)
    assert H % tile_h == 0
    assert (tile_h * W) % 8 == 0 or tile_h == H
    n_sp = H // tile_h

    # Lane-dense layouts: NHWC activations (C last), (K*K, C, O) weight (O last).
    # TODO(synk): the HBM-level pad copy could be avoided (mask boundary taps
    # in-kernel) to save a read+write pass over x on low-bandwidth parts (v5e).
    x_nhwc = jnp.transpose(x, (0, 2, 3, 1))
    x_pad = jnp.pad(x_nhwc, ((0, 0), (pad, pad), (pad, pad), (0, 0)))
    Hp, Wp = H + 2 * pad, W + 2 * pad
    y3 = y.reshape(B, 1, C)
    w_tco = jnp.transpose(weight, (2, 3, 1, 0)).reshape(K * K, C, O)

    kernel = functools.partial(
        _conv2dmod_kernel, C=C, O=O, H=H, W=W, K=K,
        tile_h=tile_h, demod=demod, mxu_dtype=mxu_dtype)

    cost = pl.CostEstimate(
        flops=2 * B * O * C * K * K * H * W,
        transcendentals=B * O,
        bytes_accessed=(x_pad.size + y3.size + w_tco.size + B * O * H * W) * 4)

    out_flat = pl.pallas_call(
        kernel,
        out_shape=jax.ShapeDtypeStruct((B, H * W, O), x.dtype),
        grid_spec=pltpu.PrefetchScalarGridSpec(
            num_scalar_prefetch=0,
            grid=(B, n_sp),
            in_specs=[
                pl.BlockSpec((1, Hp, Wp, C), lambda b, s: (b, 0, 0, 0)),
                pl.BlockSpec((1, 1, C), lambda b, s: (b, 0, 0)),
                pl.BlockSpec((K * K, C, O), lambda b, s: (0, 0, 0)),
            ],
            out_specs=pl.BlockSpec((1, tile_h * W, O), lambda b, s: (b, s, 0)),
            scratch_shapes=[pltpu.VMEM((tile_h * W, O), jnp.float32)],
        ),
        compiler_params=pltpu.CompilerParams(
            dimension_semantics=("parallel", "parallel")),
        cost_estimate=cost,
    )(x_pad, y3, w_tco)

    return jnp.transpose(out_flat.reshape(B, H, W, O), (0, 3, 1, 2))


def _reference(x, y, weight, *, demod=True):
    """Pure-JAX reproduction of the PyTorch forward, for validation."""
    B, C, H, W = x.shape
    O, _, K, _ = weight.shape
    w1 = y[:, None, :, None, None]
    weights = weight[None] * (w1 + 1.0)
    if demod:
        d = jax.lax.rsqrt(jnp.sum(weights ** 2, axis=(2, 3, 4), keepdims=True) + EPS)
        weights = weights * d
    xr = x.reshape(1, B * C, H, W)
    wr = weights.reshape(B * O, C, K, K)
    pad = (K - 1) // 2
    out = jax.lax.conv_general_dilated(
        xr, wr, window_strides=(1, 1), padding=[(pad, pad), (pad, pad)],
        feature_group_count=B, dimension_numbers=("NCHW", "OIHW", "NCHW"))
    return out.reshape(B, O, H, W)


if __name__ == "__main__":
    key = jax.random.PRNGKey(0)
    kx, ky, kw = jax.random.split(key, 3)

    B, C, H, W = 2, 4, 16, 16
    O, K = 8, 3

    x = jax.random.normal(kx, (B, C, H, W), jnp.float32)
    y = jax.random.normal(ky, (B, C), jnp.float32)

    # kaiming_normal_(a=0, mode='fan_in', nonlinearity='leaky_relu'):
    #   gain = sqrt(2), std = gain / sqrt(fan_in), fan_in = C * K * K
    fan_in = C * K * K
    std = (2.0 / fan_in) ** 0.5
    weight = std * jax.random.normal(kw, (O, C, K, K), jnp.float32)

    # tile_h=8 exercises the spatial-tiled grid (2 tiles per sample).
    out = conv2d_mod(x, y, weight, demod=True, tile_h=8)
    out = jax.block_until_ready(out)

    ref = _reference(x, y, weight, demod=True)
    assert out.shape == (B, O, H, W)
    err = float(jnp.max(jnp.abs(out - ref)))
    tol = 3e-2 * (1.0 + float(jnp.max(jnp.abs(ref))))  # bf16 MXU operands, f32 accum
    assert err < tol, f"Pallas kernel mismatch vs reference: {err} >= {tol}"
    print("KERNEL_OK")
</pallas_src>

<mosaic_0001>
module attributes {stable_mosaic.version = 11 : i64} {
  func.func @_conv2dmod_kernel(%arg0: i32, %arg1: i32, %arg2: memref<1x18x18x4xf32, #tpu.memory_space<vmem>>, %arg3: memref<1x1x4xf32, #tpu.memory_space<vmem>>, %arg4: memref<9x4x8xf32, #tpu.memory_space<vmem>>, %arg5: memref<1x128x8xf32, #tpu.memory_space<vmem>>, %arg6: memref<128x8xf32, #tpu.memory_space<vmem>>) attributes {dimension_semantics = [#tpu.dimension_semantics<parallel>, #tpu.dimension_semantics<parallel>], iteration_bounds = array<i64: 2, 2>, scalar_prefetch = 0 : i64, scratch_operands = 1 : i64, tpu.core_type = #tpu.core_type<tc>, window_params = [{transform_indices = @transform_0, window_bounds = array<i64: 1, 18, 18, 4>}, {transform_indices = @transform_1, window_bounds = array<i64: 1, 1, 4>}, {pipeline_mode = #tpu.pipeline_mode<synchronous>, transform_indices = @transform_2, window_bounds = array<i64: 9, 4, 8>}, {transform_indices = @transform_3, window_bounds = array<i64: 1, 128, 8>}]} {
    %c8_i32 = arith.constant 8 : i32
    %0 = arith.muli %arg1, %c8_i32 : i32
    %c0 = arith.constant 0 : index
    %c0_0 = arith.constant 0 : index
    %c0_1 = arith.constant 0 : index
    %1 = vector.load %arg3[%c0, %c0_0, %c0_1] : memref<1x1x4xf32, #tpu.memory_space<vmem>>, vector<1x1x4xf32>
    %2 = vector.shape_cast %1 : vector<1x1x4xf32> to vector<4xf32>
    %3 = vector.shape_cast %2 : vector<4xf32> to vector<4x1xf32>
    %cst = arith.constant 1.000000e+00 : f32
    %4 = vector.broadcast %cst : f32 to vector<4x1xf32>
    %5 = arith.addf %3, %4 : vector<4x1xf32>
    %cst_2 = arith.constant 0.000000e+00 : f32
    %6 = vector.broadcast %cst_2 : f32 to vector<1x8xf32>
    %c0_3 = arith.constant 0 : index
    %c0_4 = arith.constant 0 : index
    %c0_5 = arith.constant 0 : index
    %7 = vector.load %arg4[%c0_3, %c0_4, %c0_5] : memref<9x4x8xf32, #tpu.memory_space<vmem>>, vector<1x4x8xf32>
    %8 = vector.shape_cast %7 : vector<1x4x8xf32> to vector<4x8xf32>
    %9 = vector.broadcast %5 : vector<4x1xf32> to vector<4x8xf32>
    %10 = arith.mulf %8, %9 : vector<4x8xf32>
    %11 = arith.mulf %10, %10 : vector<4x8xf32>
    %cst_6 = arith.constant dense<0.000000e+00> : vector<8xf32>
    %12 = vector.multi_reduction <add>, %11, %cst_6 [0] : vector<4x8xf32> to vector<8xf32>
    %13 = vector.shape_cast %12 : vector<8xf32> to vector<1x8xf32>
    %14 = arith.addf %6, %13 : vector<1x8xf32>
    %c1 = arith.constant 1 : index
    %c0_7 = arith.constant 0 : index
    %c0_8 = arith.constant 0 : index
    %15 = vector.load %arg4[%c1, %c0_7, %c0_8] : memref<9x4x8xf32, #tpu.memory_space<vmem>>, vector<1x4x8xf32>
    %16 = vector.shape_cast %15 : vector<1x4x8xf32> to vector<4x8xf32>
    %17 = vector.broadcast %5 : vector<4x1xf32> to vector<4x8xf32>
    %18 = arith.mulf %16, %17 : vector<4x8xf32>
    %19 = arith.mulf %18, %18 : vector<4x8xf32>
    %cst_9 = arith.constant dense<0.000000e+00> : vector<8xf32>
    %20 = vector.multi_reduction <add>, %19, %cst_9 [0] : vector<4x8xf32> to vector<8xf32>
    %21 = vector.shape_cast %20 : vector<8xf32> to vector<1x8xf32>
    %22 = arith.addf %14, %21 : vector<1x8xf32>
    %c2 = arith.constant 2 : index
    %c0_10 = arith.constant 0 : index
    %c0_11 = arith.constant 0 : index
    %23 = vector.load %arg4[%c2, %c0_10, %c0_11] : memref<9x4x8xf32, #tpu.memory_space<vmem>>, vector<1x4x8xf32>
    %24 = vector.shape_cast %23 : vector<1x4x8xf32> to vector<4x8xf32>
    %25 = vector.broadcast %5 : vector<4x1xf32> to vector<4x8xf32>
    %26 = arith.mulf %24, %25 : vector<4x8xf32>
    %27 = arith.mulf %26, %26 : vector<4x8xf32>
    %cst_12 = arith.constant dense<0.000000e+00> : vector<8xf32>
    %28 = vector.multi_reduction <add>, %27, %cst_12 [0] : vector<4x8xf32> to vector<8xf32>
    %29 = vector.shape_cast %28 : vector<8xf32> to vector<1x8xf32>
    %30 = arith.addf %22, %29 : vector<1x8xf32>
    %c3 = arith.constant 3 : index
    %c0_13 = arith.constant 0 : index
    %c0_14 = arith.constant 0 : index
    %31 = vector.load %arg4[%c3, %c0_13, %c0_14] : memref<9x4x8xf32, #tpu.memory_space<vmem>>, vector<1x4x8xf32>
    %32 = vector.shape_cast %31 : vector<1x4x8xf32> to vector<4x8xf32>
    %33 = vector.broadcast %5 : vector<4x1xf32> to vector<4x8xf32>
    %34 = arith.mulf %32, %33 : vector<4x8xf32>
    %35 = arith.mulf %34, %34 : vector<4x8xf32>
    %cst_15 = arith.constant dense<0.000000e+00> : vector<8xf32>
    %36 = vector.multi_reduction <add>, %35, %cst_15 [0] : vector<4x8xf32> to vector<8xf32>
    %37 = vector.shape_cast %36 : vector<8xf32> to vector<1x8xf32>
    %38 = arith.addf %30, %37 : vector<1x8xf32>
    %c4 = arith.constant 4 : index
    %c0_16 = arith.constant 0 : index
    %c0_17 = arith.constant 0 : index
    %39 = vector.load %arg4[%c4, %c0_16, %c0_17] : memref<9x4x8xf32, #tpu.memory_space<vmem>>, vector<1x4x8xf32>
    %40 = vector.shape_cast %39 : vector<1x4x8xf32> to vector<4x8xf32>
    %41 = vector.broadcast %5 : vector<4x1xf32> to vector<4x8xf32>
    %42 = arith.mulf %40, %41 : vector<4x8xf32>
    %43 = arith.mulf %42, %42 : vector<4x8xf32>
    %cst_18 = arith.constant dense<0.000000e+00> : vector<8xf32>
    %44 = vector.multi_reduction <add>, %43, %cst_18 [0] : vector<4x8xf32> to vector<8xf32>
    %45 = vector.shape_cast %44 : vector<8xf32> to vector<1x8xf32>
    %46 = arith.addf %38, %45 : vector<1x8xf32>
    %c5 = arith.constant 5 : index
    %c0_19 = arith.constant 0 : index
    %c0_20 = arith.constant 0 : index
    %47 = vector.load %arg4[%c5, %c0_19, %c0_20] : memref<9x4x8xf32, #tpu.memory_space<vmem>>, vector<1x4x8xf32>
    %48 = vector.shape_cast %47 : vector<1x4x8xf32> to vector<4x8xf32>
    %49 = vector.broadcast %5 : vector<4x1xf32> to vector<4x8xf32>
    %50 = arith.mulf %48, %49 : vector<4x8xf32>
    %51 = arith.mulf %50, %50 : vector<4x8xf32>
    %cst_21 = arith.constant dense<0.000000e+00> : vector<8xf32>
    %52 = vector.multi_reduction <add>, %51, %cst_21 [0] : vector<4x8xf32> to vector<8xf32>
    %53 = vector.shape_cast %52 : vector<8xf32> to vector<1x8xf32>
    %54 = arith.addf %46, %53 : vector<1x8xf32>
    %c6 = arith.constant 6 : index
    %c0_22 = arith.constant 0 : index
    %c0_23 = arith.constant 0 : index
    %55 = vector.load %arg4[%c6, %c0_22, %c0_23] : memref<9x4x8xf32, #tpu.memory_space<vmem>>, vector<1x4x8xf32>
    %56 = vector.shape_cast %55 : vector<1x4x8xf32> to vector<4x8xf32>
    %57 = vector.broadcast %5 : vector<4x1xf32> to vector<4x8xf32>
    %58 = arith.mulf %56, %57 : vector<4x8xf32>
    %59 = arith.mulf %58, %58 : vector<4x8xf32>
    %cst_24 = arith.constant dense<0.000000e+00> : vector<8xf32>
    %60 = vector.multi_reduction <add>, %59, %cst_24 [0] : vector<4x8xf32> to vector<8xf32>
    %61 = vector.shape_cast %60 : vector<8xf32> to vector<1x8xf32>
    %62 = arith.addf %54, %61 : vector<1x8xf32>
    %c7 = arith.constant 7 : index
    %c0_25 = arith.constant 0 : index
    %c0_26 = arith.constant 0 : index
    %63 = vector.load %arg4[%c7, %c0_25, %c0_26] : memref<9x4x8xf32, #tpu.memory_space<vmem>>, vector<1x4x8xf32>
    %64 = vector.shape_cast %63 : vector<1x4x8xf32> to vector<4x8xf32>
    %65 = vector.broadcast %5 : vector<4x1xf32> to vector<4x8xf32>
    %66 = arith.mulf %64, %65 : vector<4x8xf32>
    %67 = arith.mulf %66, %66 : vector<4x8xf32>
    %cst_27 = arith.constant dense<0.000000e+00> : vector<8xf32>
    %68 = vector.multi_reduction <add>, %67, %cst_27 [0] : vector<4x8xf32> to vector<8xf32>
    %69 = vector.shape_cast %68 : vector<8xf32> to vector<1x8xf32>
    %70 = arith.addf %62, %69 : vector<1x8xf32>
    %c8 = arith.constant 8 : index
    %c0_28 = arith.constant 0 : index
    %c0_29 = arith.constant 0 : index
    %71 = vector.load %arg4[%c8, %c0_28, %c0_29] : memref<9x4x8xf32, #tpu.memory_space<vmem>>, vector<1x4x8xf32>
    %72 = vector.shape_cast %71 : vector<1x4x8xf32> to vector<4x8xf32>
    %73 = vector.broadcast %5 : vector<4x1xf32> to vector<4x8xf32>
    %74 = arith.mulf %72, %73 : vector<4x8xf32>
    %75 = arith.mulf %74, %74 : vector<4x8xf32>
    %cst_30 = arith.constant dense<0.000000e+00> : vector<8xf32>
    %76 = vector.multi_reduction <add>, %75, %cst_30 [0] : vector<4x8xf32> to vector<8xf32>
    %77 = vector.shape_cast %76 : vector<8xf32> to vector<1x8xf32>
    %78 = arith.addf %70, %77 : vector<1x8xf32>
    %cst_31 = arith.constant 9.99999993E-9 : f32
    %79 = vector.broadcast %cst_31 : f32 to vector<1x8xf32>
    %80 = arith.addf %78, %79 : vector<1x8xf32>
    %81 = math.rsqrt %80 : vector<1x8xf32>
    %cst_32 = arith.constant 0.000000e+00 : f32
    %82 = vector.broadcast %cst_32 : f32 to vector<128x8xf32>
    %c0_33 = arith.constant 0 : index
    %c0_34 = arith.constant 0 : index
    %83 = vector.load %arg6[%c0_33, %c0_34] : memref<128x8xf32, #tpu.memory_space<vmem>>, vector<128x8xf32>
    tpu.vector_store %arg6[%c0_33, %c0_34], %82 {strides = array<i32>} : memref<128x8xf32, #tpu.memory_space<vmem>>, vector<128x8xf32>,
    %c0_35 = arith.constant 0 : index
    %c0_36 = arith.constant 0 : index
    %c0_37 = arith.constant 0 : index
    %84 = vector.load %arg4[%c0_35, %c0_36, %c0_37] : memref<9x4x8xf32, #tpu.memory_space<vmem>>, vector<1x4x8xf32>
    %85 = vector.shape_cast %84 : vector<1x4x8xf32> to vector<4x8xf32>
    %86 = vector.broadcast %5 : vector<4x1xf32> to vector<4x8xf32>
    %87 = arith.mulf %85, %86 : vector<4x8xf32>
    %88 = vector.broadcast %81 : vector<1x8xf32> to vector<4x8xf32>
    %89 = arith.mulf %87, %88 : vector<4x8xf32>
    %90 = arith.truncf %89 : vector<4x8xf32> to vector<4x8xbf16>
    %c0_i32 = arith.constant 0 : i32
    %91 = arith.addi %0, %c0_i32 : i32
    %c0_38 = arith.constant 0 : index
    %92 = arith.index_cast %91 : i32 to index
    %c0_39 = arith.constant 0 : index
    %c0_40 = arith.constant 0 : index
    %93 = vector.load %arg2[%c0_38, %92, %c0_39, %c0_40] : memref<1x18x18x4xf32, #tpu.memory_space<vmem>>, vector<1x8x16x4xf32>
    %94 = vector.shape_cast %93 : vector<1x8x16x4xf32> to vector<8x16x4xf32>
    %95 = vector.shape_cast %94 : vector<8x16x4xf32> to vector<128x4xf32>
    %96 = arith.truncf %95 : vector<128x4xf32> to vector<128x4xbf16>
    %c0_41 = arith.constant 0 : index
    %c0_42 = arith.constant 0 : index
    %97 = vector.load %arg6[%c0_41, %c0_42] : memref<128x8xf32, #tpu.memory_space<vmem>>, vector<128x8xf32>
    %cst_43 = arith.constant dense<0.000000e+00> : vector<128x8xf32>
    %98 = tpu.matmul %96, %90, %cst_43 {dimension_numbers = #tpu.dot_dimension_numbers<[1], [0], [0], [1], [0, 0, 1, 1], [], []>} : vector<128x4xbf16>, vector<4x8xbf16>, vector<128x8xf32> -> vector<128x8xf32>
    %99 = arith.addf %97, %98 : vector<128x8xf32>
    %c0_44 = arith.constant 0 : index
    %c0_45 = arith.constant 0 : index
    %100 = vector.load %arg6[%c0_44, %c0_45] : memref<128x8xf32, #tpu.memory_space<vmem>>, vector<128x8xf32>
    tpu.vector_store %arg6[%c0_44, %c0_45], %99 {strides = array<i32>} : memref<128x8xf32, #tpu.memory_space<vmem>>, vector<128x8xf32>,
    %c1_46 = arith.constant 1 : index
    %c0_47 = arith.constant 0 : index
    %c0_48 = arith.constant 0 : index
    %101 = vector.load %arg4[%c1_46, %c0_47, %c0_48] : memref<9x4x8xf32, #tpu.memory_space<vmem>>, vector<1x4x8xf32>
    %102 = vector.shape_cast %101 : vector<1x4x8xf32> to vector<4x8xf32>
    %103 = vector.broadcast %5 : vector<4x1xf32> to vector<4x8xf32>
    %104 = arith.mulf %102, %103 : vector<4x8xf32>
    %105 = vector.broadcast %81 : vector<1x8xf32> to vector<4x8xf32>
    %106 = arith.mulf %104, %105 : vector<4x8xf32>
    %107 = arith.truncf %106 : vector<4x8xf32> to vector<4x8xbf16>
    %c0_i32_49 = arith.constant 0 : i32
    %108 = arith.addi %0, %c0_i32_49 : i32
    %c0_50 = arith.constant 0 : index
    %109 = arith.index_cast %108 : i32 to index
    %c1_51 = arith.constant 1 : index
    %c0_52 = arith.constant 0 : index
    %110 = vector.load %arg2[%c0_50, %109, %c1_51, %c0_52] : memref<1x18x18x4xf32, #tpu.memory_space<vmem>>, vector<1x8x16x4xf32>
    %111 = vector.shape_cast %110 : vector<1x8x16x4xf32> to vector<8x16x4xf32>
    %112 = vector.shape_cast %111 : vector<8x16x4xf32> to vector<128x4xf32>
    %113 = arith.truncf %112 : vector<128x4xf32> to vector<128x4xbf16>
    %c0_53 = arith.constant 0 : index
    %c0_54 = arith.constant 0 : index
    %114 = vector.load %arg6[%c0_53, %c0_54] : memref<128x8xf32, #tpu.memory_space<vmem>>, vector<128x8xf32>
    %cst_55 = arith.constant dense<0.000000e+00> : vector<128x8xf32>
    %115 = tpu.matmul %113, %107, %cst_55 {dimension_numbers = #tpu.dot_dimension_numbers<[1], [0], [0], [1], [0, 0, 1, 1], [], []>} : vector<128x4xbf16>, vector<4x8xbf16>, vector<128x8xf32> -> vector<128x8xf32>
    %116 = arith.addf %114, %115 : vector<128x8xf32>
    %c0_56 = arith.constant 0 : index
    %c0_57 = arith.constant 0 : index
    %117 = vector.load %arg6[%c0_56, %c0_57] : memref<128x8xf32, #tpu.memory_space<vmem>>, vector<128x8xf32>
    tpu.vector_store %arg6[%c0_56, %c0_57], %116 {strides = array<i32>} : memref<128x8xf32, #tpu.memory_space<vmem>>, vector<128x8xf32>,
    %c2_58 = arith.constant 2 : index
    %c0_59 = arith.constant 0 : index
    %c0_60 = arith.constant 0 : index
    %118 = vector.load %arg4[%c2_58, %c0_59, %c0_60] : memref<9x4x8xf32, #tpu.memory_space<vmem>>, vector<1x4x8xf32>
    %119 = vector.shape_cast %118 : vector<1x4x8xf32> to vector<4x8xf32>
    %120 = vector.broadcast %5 : vector<4x1xf32> to vector<4x8xf32>
    %121 = arith.mulf %119, %120 : vector<4x8xf32>
    %122 = vector.broadcast %81 : vector<1x8xf32> to vector<4x8xf32>
    %123 = arith.mulf %121, %122 : vector<4x8xf32>
    %124 = arith.truncf %123 : vector<4x8xf32> to vector<4x8xbf16>
    %c0_i32_61 = arith.constant 0 : i32
    %125 = arith.addi %0, %c0_i32_61 : i32
    %c0_62 = arith.constant 0 : index
    %126 = arith.index_cast %125 : i32 to index
    %c2_63 = arith.constant 2 : index
    %c0_64 = arith.constant 0 : index
    %127 = vector.load %arg2[%c0_62, %126, %c2_63, %c0_64] : memref<1x18x18x4xf32, #tpu.memory_space<vmem>>, vector<1x8x16x4xf32>
    %128 = vector.shape_cast %127 : vector<1x8x16x4xf32> to vector<8x16x4xf32>
    %129 = vector.shape_cast %128 : vector<8x16x4xf32> to vector<128x4xf32>
    %130 = arith.truncf %129 : vector<128x4xf32> to vector<128x4xbf16>
    %c0_65 = arith.constant 0 : index
    %c0_66 = arith.constant 0 : index
    %131 = vector.load %arg6[%c0_65, %c0_66] : memref<128x8xf32, #tpu.memory_space<vmem>>, vector<128x8xf32>
    %cst_67 = arith.constant dense<0.000000e+00> : vector<128x8xf32>
    %132 = tpu.matmul %130, %124, %cst_67 {dimension_numbers = #tpu.dot_dimension_numbers<[1], [0], [0], [1], [0, 0, 1, 1], [], []>} : vector<128x4xbf16>, vector<4x8xbf16>, vector<128x8xf32> -> vector<128x8xf32>
    %133 = arith.addf %131, %132 : vector<128x8xf32>
    %c0_68 = arith.constant 0 : index
    %c0_69 = arith.constant 0 : index
    %134 = vector.load %arg6[%c0_68, %c0_69] : memref<128x8xf32, #tpu.memory_space<vmem>>, vector<128x8xf32>
    tpu.vector_store %arg6[%c0_68, %c0_69], %133 {strides = array<i32>} : memref<128x8xf32, #tpu.memory_space<vmem>>, vector<128x8xf32>,
    %c3_70 = arith.constant 3 : index
    %c0_71 = arith.constant 0 : index
    %c0_72 = arith.constant 0 : index
    %135 = vector.load %arg4[%c3_70, %c0_71, %c0_72] : memref<9x4x8xf32, #tpu.memory_space<vmem>>, vector<1x4x8xf32>
    %136 = vector.shape_cast %135 : vector<1x4x8xf32> to vector<4x8xf32>
    %137 = vector.broadcast %5 : vector<4x1xf32> to vector<4x8xf32>
    %138 = arith.mulf %136, %137 : vector<4x8xf32>
    %139 = vector.broadcast %81 : vector<1x8xf32> to vector<4x8xf32>
    %140 = arith.mulf %138, %139 : vector<4x8xf32>
    %141 = arith.truncf %140 : vector<4x8xf32> to vector<4x8xbf16>
    %c1_i32 = arith.constant 1 : i32
    %142 = arith.addi %0, %c1_i32 : i32
    %c0_73 = arith.constant 0 : index
    %143 = arith.index_cast %142 : i32 to index
    %c0_74 = arith.constant 0 : index
    %c0_75 = arith.constant 0 : index
    %144 = vector.load %arg2[%c0_73, %143, %c0_74, %c0_75] : memref<1x18x18x4xf32, #tpu.memory_space<vmem>>, vector<1x8x16x4xf32>
    %145 = vector.shape_cast %144 : vector<1x8x16x4xf32> to vector<8x16x4xf32>
    %146 = vector.shape_cast %145 : vector<8x16x4xf32> to vector<128x4xf32>
    %147 = arith.truncf %146 : vector<128x4xf32> to vector<128x4xbf16>
    %c0_76 = arith.constant 0 : index
    %c0_77 = arith.constant 0 : index
    %148 = vector.load %arg6[%c0_76, %c0_77] : memref<128x8xf32, #tpu.memory_space<vmem>>, vector<128x8xf32>
    %cst_78 = arith.constant dense<0.000000e+00> : vector<128x8xf32>
    %149 = tpu.matmul %147, %141, %cst_78 {dimension_numbers = #tpu.dot_dimension_numbers<[1], [0], [0], [1], [0, 0, 1, 1], [], []>} : vector<128x4xbf16>, vector<4x8xbf16>, vector<128x8xf32> -> vector<128x8xf32>
    %150 = arith.addf %148, %149 : vector<128x8xf32>
    %c0_79 = arith.constant 0 : index
    %c0_80 = arith.constant 0 : index
    %151 = vector.load %arg6[%c0_79, %c0_80] : memref<128x8xf32, #tpu.memory_space<vmem>>, vector<128x8xf32>
    tpu.vector_store %arg6[%c0_79, %c0_80], %150 {strides = array<i32>} : memref<128x8xf32, #tpu.memory_space<vmem>>, vector<128x8xf32>,
    %c4_81 = arith.constant 4 : index
    %c0_82 = arith.constant 0 : index
    %c0_83 = arith.constant 0 : index
    %152 = vector.load %arg4[%c4_81, %c0_82, %c0_83] : memref<9x4x8xf32, #tpu.memory_space<vmem>>, vector<1x4x8xf32>
    %153 = vector.shape_cast %152 : vector<1x4x8xf32> to vector<4x8xf32>
    %154 = vector.broadcast %5 : vector<4x1xf32> to vector<4x8xf32>
    %155 = arith.mulf %153, %154 : vector<4x8xf32>
    %156 = vector.broadcast %81 : vector<1x8xf32> to vector<4x8xf32>
    %157 = arith.mulf %155, %156 : vector<4x8xf32>
    %158 = arith.truncf %157 : vector<4x8xf32> to vector<4x8xbf16>
    %c1_i32_84 = arith.constant 1 : i32
    %159 = arith.addi %0, %c1_i32_84 : i32
    %c0_85 = arith.constant 0 : index
    %160 = arith.index_cast %159 : i32 to index
    %c1_86 = arith.constant 1 : index
    %c0_87 = arith.constant 0 : index
    %161 = vector.load %arg2[%c0_85, %160, %c1_86, %c0_87] : memref<1x18x18x4xf32, #tpu.memory_space<vmem>>, vector<1x8x16x4xf32>
    %162 = vector.shape_cast %161 : vector<1x8x16x4xf32> to vector<8x16x4xf32>
    %163 = vector.shape_cast %162 : vector<8x16x4xf32> to vector<128x4xf32>
    %164 = arith.truncf %163 : vector<128x4xf32> to vector<128x4xbf16>
    %c0_88 = arith.constant 0 : index
    %c0_89 = arith.constant 0 : index
    %165 = vector.load %arg6[%c0_88, %c0_89] : memref<128x8xf32, #tpu.memory_space<vmem>>, vector<128x8xf32>
    %cst_90 = arith.constant dense<0.000000e+00> : vector<128x8xf32>
    %166 = tpu.matmul %164, %158, %cst_90 {dimension_numbers = #tpu.dot_dimension_numbers<[1], [0], [0], [1], [0, 0, 1, 1], [], []>} : vector<128x4xbf16>, vector<4x8xbf16>, vector<128x8xf32> -> vector<128x8xf32>
    %167 = arith.addf %165, %166 : vector<128x8xf32>
    %c0_91 = arith.constant 0 : index
    %c0_92 = arith.constant 0 : index
    %168 = vector.load %arg6[%c0_91, %c0_92] : memref<128x8xf32, #tpu.memory_space<vmem>>, vector<128x8xf32>
    tpu.vector_store %arg6[%c0_91, %c0_92], %167 {strides = array<i32>} : memref<128x8xf32, #tpu.memory_space<vmem>>, vector<128x8xf32>,
    %c5_93 = arith.constant 5 : index
    %c0_94 = arith.constant 0 : index
    %c0_95 = arith.constant 0 : index
    %169 = vector.load %arg4[%c5_93, %c0_94, %c0_95] : memref<9x4x8xf32, #tpu.memory_space<vmem>>, vector<1x4x8xf32>
    %170 = vector.shape_cast %169 : vector<1x4x8xf32> to vector<4x8xf32>
    %171 = vector.broadcast %5 : vector<4x1xf32> to vector<4x8xf32>
    %172 = arith.mulf %170, %171 : vector<4x8xf32>
    %173 = vector.broadcast %81 : vector<1x8xf32> to vector<4x8xf32>
    %174 = arith.mulf %172, %173 : vector<4x8xf32>
    %175 = arith.truncf %174 : vector<4x8xf32> to vector<4x8xbf16>
    %c1_i32_96 = arith.constant 1 : i32
    %176 = arith.addi %0, %c1_i32_96 : i32
    %c0_97 = arith.constant 0 : index
    %177 = arith.index_cast %176 : i32 to index
    %c2_98 = arith.constant 2 : index
    %c0_99 = arith.constant 0 : index
    %178 = vector.load %arg2[%c0_97, %177, %c2_98, %c0_99] : memref<1x18x18x4xf32, #tpu.memory_space<vmem>>, vector<1x8x16x4xf32>
    %179 = vector.shape_cast %178 : vector<1x8x16x4xf32> to vector<8x16x4xf32>
    %180 = vector.shape_cast %179 : vector<8x16x4xf32> to vector<128x4xf32>
    %181 = arith.truncf %180 : vector<128x4xf32> to vector<128x4xbf16>
    %c0_100 = arith.constant 0 : index
    %c0_101 = arith.constant 0 : index
    %182 = vector.load %arg6[%c0_100, %c0_101] : memref<128x8xf32, #tpu.memory_space<vmem>>, vector<128x8xf32>
    %cst_102 = arith.constant dense<0.000000e+00> : vector<128x8xf32>
    %183 = tpu.matmul %181, %175, %cst_102 {dimension_numbers = #tpu.dot_dimension_numbers<[1], [0], [0], [1], [0, 0, 1, 1], [], []>} : vector<128x4xbf16>, vector<4x8xbf16>, vector<128x8xf32> -> vector<128x8xf32>
    %184 = arith.addf %182, %183 : vector<128x8xf32>
    %c0_103 = arith.constant 0 : index
    %c0_104 = arith.constant 0 : index
    %185 = vector.load %arg6[%c0_103, %c0_104] : memref<128x8xf32, #tpu.memory_space<vmem>>, vector<128x8xf32>
    tpu.vector_store %arg6[%c0_103, %c0_104], %184 {strides = array<i32>} : memref<128x8xf32, #tpu.memory_space<vmem>>, vector<128x8xf32>,
    %c6_105 = arith.constant 6 : index
    %c0_106 = arith.constant 0 : index
    %c0_107 = arith.constant 0 : index
    %186 = vector.load %arg4[%c6_105, %c0_106, %c0_107] : memref<9x4x8xf32, #tpu.memory_space<vmem>>, vector<1x4x8xf32>
    %187 = vector.shape_cast %186 : vector<1x4x8xf32> to vector<4x8xf32>
    %188 = vector.broadcast %5 : vector<4x1xf32> to vector<4x8xf32>
    %189 = arith.mulf %187, %188 : vector<4x8xf32>
    %190 = vector.broadcast %81 : vector<1x8xf32> to vector<4x8xf32>
    %191 = arith.mulf %189, %190 : vector<4x8xf32>
    %192 = arith.truncf %191 : vector<4x8xf32> to vector<4x8xbf16>
    %c2_i32 = arith.constant 2 : i32
    %193 = arith.addi %0, %c2_i32 : i32
    %c0_108 = arith.constant 0 : index
    %194 = arith.index_cast %193 : i32 to index
    %c0_109 = arith.constant 0 : index
    %c0_110 = arith.constant 0 : index
    %195 = vector.load %arg2[%c0_108, %194, %c0_109, %c0_110] : memref<1x18x18x4xf32, #tpu.memory_space<vmem>>, vector<1x8x16x4xf32>
    %196 = vector.shape_cast %195 : vector<1x8x16x4xf32> to vector<8x16x4xf32>
    %197 = vector.shape_cast %196 : vector<8x16x4xf32> to vector<128x4xf32>
    %198 = arith.truncf %197 : vector<128x4xf32> to vector<128x4xbf16>
    %c0_111 = arith.constant 0 : index
    %c0_112 = arith.constant 0 : index
    %199 = vector.load %arg6[%c0_111, %c0_112] : memref<128x8xf32, #tpu.memory_space<vmem>>, vector<128x8xf32>
    %cst_113 = arith.constant dense<0.000000e+00> : vector<128x8xf32>
    %200 = tpu.matmul %198, %192, %cst_113 {dimension_numbers = #tpu.dot_dimension_numbers<[1], [0], [0], [1], [0, 0, 1, 1], [], []>} : vector<128x4xbf16>, vector<4x8xbf16>, vector<128x8xf32> -> vector<128x8xf32>
    %201 = arith.addf %199, %200 : vector<128x8xf32>
    %c0_114 = arith.constant 0 : index
    %c0_115 = arith.constant 0 : index
    %202 = vector.load %arg6[%c0_114, %c0_115] : memref<128x8xf32, #tpu.memory_space<vmem>>, vector<128x8xf32>
    tpu.vector_store %arg6[%c0_114, %c0_115], %201 {strides = array<i32>} : memref<128x8xf32, #tpu.memory_space<vmem>>, vector<128x8xf32>,
    %c7_116 = arith.constant 7 : index
    %c0_117 = arith.constant 0 : index
    %c0_118 = arith.constant 0 : index
    %203 = vector.load %arg4[%c7_116, %c0_117, %c0_118] : memref<9x4x8xf32, #tpu.memory_space<vmem>>, vector<1x4x8xf32>
    %204 = vector.shape_cast %203 : vector<1x4x8xf32> to vector<4x8xf32>
    %205 = vector.broadcast %5 : vector<4x1xf32> to vector<4x8xf32>
    %206 = arith.mulf %204, %205 : vector<4x8xf32>
    %207 = vector.broadcast %81 : vector<1x8xf32> to vector<4x8xf32>
    %208 = arith.mulf %206, %207 : vector<4x8xf32>
    %209 = arith.truncf %208 : vector<4x8xf32> to vector<4x8xbf16>
    %c2_i32_119 = arith.constant 2 : i32
    %210 = arith.addi %0, %c2_i32_119 : i32
    %c0_120 = arith.constant 0 : index
    %211 = arith.index_cast %210 : i32 to index
    %c1_121 = arith.constant 1 : index
    %c0_122 = arith.constant 0 : index
    %212 = vector.load %arg2[%c0_120, %211, %c1_121, %c0_122] : memref<1x18x18x4xf32, #tpu.memory_space<vmem>>, vector<1x8x16x4xf32>
    %213 = vector.shape_cast %212 : vector<1x8x16x4xf32> to vector<8x16x4xf32>
    %214 = vector.shape_cast %213 : vector<8x16x4xf32> to vector<128x4xf32>
    %215 = arith.truncf %214 : vector<128x4xf32> to vector<128x4xbf16>
    %c0_123 = arith.constant 0 : index
    %c0_124 = arith.constant 0 : index
    %216 = vector.load %arg6[%c0_123, %c0_124] : memref<128x8xf32, #tpu.memory_space<vmem>>, vector<128x8xf32>
    %cst_125 = arith.constant dense<0.000000e+00> : vector<128x8xf32>
    %217 = tpu.matmul %215, %209, %cst_125 {dimension_numbers = #tpu.dot_dimension_numbers<[1], [0], [0], [1], [0, 0, 1, 1], [], []>} : vector<128x4xbf16>, vector<4x8xbf16>, vector<128x8xf32> -> vector<128x8xf32>
    %218 = arith.addf %216, %217 : vector<128x8xf32>
    %c0_126 = arith.constant 0 : index
    %c0_127 = arith.constant 0 : index
    %219 = vector.load %arg6[%c0_126, %c0_127] : memref<128x8xf32, #tpu.memory_space<vmem>>, vector<128x8xf32>
    tpu.vector_store %arg6[%c0_126, %c0_127], %218 {strides = array<i32>} : memref<128x8xf32, #tpu.memory_space<vmem>>, vector<128x8xf32>,
    %c8_128 = arith.constant 8 : index
    %c0_129 = arith.constant 0 : index
    %c0_130 = arith.constant 0 : index
    %220 = vector.load %arg4[%c8_128, %c0_129, %c0_130] : memref<9x4x8xf32, #tpu.memory_space<vmem>>, vector<1x4x8xf32>
    %221 = vector.shape_cast %220 : vector<1x4x8xf32> to vector<4x8xf32>
    %222 = vector.broadcast %5 : vector<4x1xf32> to vector<4x8xf32>
    %223 = arith.mulf %221, %222 : vector<4x8xf32>
    %224 = vector.broadcast %81 : vector<1x8xf32> to vector<4x8xf32>
    %225 = arith.mulf %223, %224 : vector<4x8xf32>
    %226 = arith.truncf %225 : vector<4x8xf32> to vector<4x8xbf16>
    %c2_i32_131 = arith.constant 2 : i32
    %227 = arith.addi %0, %c2_i32_131 : i32
    %c0_132 = arith.constant 0 : index
    %228 = arith.index_cast %227 : i32 to index
    %c2_133 = arith.constant 2 : index
    %c0_134 = arith.constant 0 : index
    %229 = vector.load %arg2[%c0_132, %228, %c2_133, %c0_134] : memref<1x18x18x4xf32, #tpu.memory_space<vmem>>, vector<1x8x16x4xf32>
    %230 = vector.shape_cast %229 : vector<1x8x16x4xf32> to vector<8x16x4xf32>
    %231 = vector.shape_cast %230 : vector<8x16x4xf32> to vector<128x4xf32>
    %232 = arith.truncf %231 : vector<128x4xf32> to vector<128x4xbf16>
    %c0_135 = arith.constant 0 : index
    %c0_136 = arith.constant 0 : index
    %233 = vector.load %arg6[%c0_135, %c0_136] : memref<128x8xf32, #tpu.memory_space<vmem>>, vector<128x8xf32>
    %cst_137 = arith.constant dense<0.000000e+00> : vector<128x8xf32>
    %234 = tpu.matmul %232, %226, %cst_137 {dimension_numbers = #tpu.dot_dimension_numbers<[1], [0], [0], [1], [0, 0, 1, 1], [], []>} : vector<128x4xbf16>, vector<4x8xbf16>, vector<128x8xf32> -> vector<128x8xf32>
    %235 = arith.addf %233, %234 : vector<128x8xf32>
    %c0_138 = arith.constant 0 : index
    %c0_139 = arith.constant 0 : index
    %236 = vector.load %arg6[%c0_138, %c0_139] : memref<128x8xf32, #tpu.memory_space<vmem>>, vector<128x8xf32>
    tpu.vector_store %arg6[%c0_138, %c0_139], %235 {strides = array<i32>} : memref<128x8xf32, #tpu.memory_space<vmem>>, vector<128x8xf32>,
    %c0_140 = arith.constant 0 : index
    %c0_141 = arith.constant 0 : index
    %237 = vector.load %arg6[%c0_140, %c0_141] : memref<128x8xf32, #tpu.memory_space<vmem>>, vector<128x8xf32>
    %c0_142 = arith.constant 0 : index
    %c0_143 = arith.constant 0 : index
    %c0_144 = arith.constant 0 : index
    %238 = vector.load %arg5[%c0_142, %c0_143, %c0_144] : memref<1x128x8xf32, #tpu.memory_space<vmem>>, vector<1x128x8xf32>
    %239 = vector.shape_cast %238 : vector<1x128x8xf32> to vector<128x8xf32>
    %240 = vector.shape_cast %237 : vector<128x8xf32> to vector<1x128x8xf32>
    tpu.vector_store %arg5[%c0_142, %c0_143, %c0_144], %240 {strides = array<i32>} : memref<1x128x8xf32, #tpu.memory_space<vmem>>, vector<1x128x8xf32>,
    return
  }
  func.func @transform_0(%arg0: i32, %arg1: i32) -> (i32, i32, i32, i32) {
    %c0_i32 = arith.constant 0 : i32
    %c0_i32_0 = arith.constant 0 : i32
    %c0_i32_1 = arith.constant 0 : i32
    %c0_i32_2 = arith.constant 0 : i32
    return %arg0, %c0_i32, %c0_i32_0, %c0_i32_1 : i32, i32, i32, i32
  }
  func.func @transform_1(%arg0: i32, %arg1: i32) -> (i32, i32, i32) {
    %c0_i32 = arith.constant 0 : i32
    %c0_i32_0 = arith.constant 0 : i32
    %c0_i32_1 = arith.constant 0 : i32
    return %arg0, %c0_i32, %c0_i32_0 : i32, i32, i32
  }
  func.func @transform_2(%arg0: i32, %arg1: i32) -> (i32, i32, i32) {
    %c0_i32 = arith.constant 0 : i32
    %c0_i32_0 = arith.constant 0 : i32
    %c0_i32_1 = arith.constant 0 : i32
    %c0_i32_2 = arith.constant 0 : i32
    return %c0_i32, %c0_i32_0, %c0_i32_1 : i32, i32, i32
  }
  func.func @transform_3(%arg0: i32, %arg1: i32) -> (i32, i32, i32) {
    %c0_i32 = arith.constant 0 : i32
    %c0_i32_0 = arith.constant 0 : i32
    return %arg0, %arg1, %c0_i32 : i32, i32, i32
  }
}

</mosaic_0001>

<bundles_post_ra>
// kernel: tpu_custom_call.1
= control target key start
LH: loop header
LB: loop body
LE: loop exit
PB: predicated region body
PF: predicated region fallthrough
CT: control target
= control target key end

     0   :  { %s2853_s12 = smov 0   ;;  %s2855_s13 = smov 0   ;;  %s3487_s0 = inlined_call_operand.vmem [shape: f32[2,18,18,4], index: 0, kind: input, shape index: {}]   ;;  %s3488_s1 = inlined_call_operand.vmem [shape: f32[2,1,4], index: 1, kind: input, shape index: {}]   ;;  %s3489_s2 = inlined_call_operand.vmem [shape: f32[9,4,8], index: 2, kind: input, shape index: {}]   ;;  %s3490_s3 = inlined_call_operand.vmem [shape: f32[2,256,8], index: 3, kind: output, shape index: {}]  }
   0x1   :  { %s2857_s14 = smov 0   ;;  %s2859_s15 = smov 0  }
   0x2   :  { %s2861_s16 = smov 0  }
   0x3 LB: > { %s22_s17 = sadd.s32 1, %s2822_s14  ;;  %s25_s18 = sadd.s32 1, %s2826_s15  ;;  %s2830_s16 = sphi %s2861_s16, %s13_s16   ;;  %s2826_s15 = sphi %s2859_s15, %s3495_s15   ;;  %s2822_s14 = sphi %s2857_s14, %s3494_s14   ;;  %s2818_s13 = sphi %s2855_s13, %s3493_s13   ;;  %s2814_s12 = sphi %s2853_s12, %s3492_s12  }
   0x4   : > { %p23_p0 = scmp.ge.s32.totalorder %s22_s17, 2  ;;  %p2295_p1 = scmp.ge.s32.totalorder %s2830_s16, 1 }
   0x5   : > { %p159_p2 = scmp.lt.s32.totalorder %s2830_s16, 5 }
   0x6   : > { %s3497_s17 = smov (%p23_p0, %s22_s17), 0  ;;  %s3499_s18 = smov (!%p23_p0, %s25_s18), %s2826_s15 }
   0x7   : > { %p160_p3 = pnand %p2295_p1, %p159_p2  ;;  %p27_p4 = scmp.ge.s32.totalorder %s3499_s18, 2 }
   0x8   : > { %p190_p5 = scmp.lt.s32.totalorder (!%p160_p3), %s2818_s13, 1  ;;  %s2310_s23 = smul.u32 (!%p160_p3), 192, %s2814_s12 }
   0x9   : > { %s3501_s18 = smov (%p27_p4, %s3499_s18), 0  ;;  %163 = sbr.rel (%p160_p3) target bundleno = 547 (0x223), region = 32 }
   0xe   : > { %s3503_s13 = smov (!%p190_p5, %s2818_s13), 1  ;;  %vm392_vm0 = vcmask 31744   ;;  %v219_v7 = vld [vmem:[%s3489_s2] sm:$0xf]  ;;  %v2302_v8 = vld [vmem:[%s3489_s2 + $0x4] sm:$0xf] }
   0xf   : > { %s197_s21 = scalar_lea.vmem %s3488_s1, %s3503_s13  ;;  %s2748_s22 = smul.u32 432, %s3503_s13  ;;  %v2303_v9 = vld [vmem:[%s3489_s2 + $0x8] sm:$0xf]  ;;  %v2304_v11 = vld [vmem:[%s3489_s2 + $0xc] sm:$0xf]  ;;  %vm222_vm1 = vcmask 60416  }
  0x10   : > { %v2301_v0 = vld [vmem:[%s197_s21] ss:$0 sm:$0xff]  ;;  %v2305_v12 = vld [vmem:[%s3489_s2 + $0x10] sm:$0xf]  ;;  %v2306_v13 = vld [vmem:[%s3489_s2 + $0x14] sm:$0xf] }
  0x11   : > { %216 = vbcast.lane.b32.xlu0 %v2301_v0, 256  ;;  %s194_s26 = scalar_lea.vmem %s3487_s0, %s2748_s22  ;;  %v2307_v15 = vld [vmem:[%s3489_s2 + $0x18] sm:$0xf]  ;;  %v2308_v16 = vld [vmem:[%s3489_s2 + $0x1c] sm:$0xf]  ;;  %vm417_vm2 = vcmask 1041408  }
  0x12   : > { %s2896_s27 = scalar_lea.vmem %s194_s26, %s2310_s23  ;;  %vm329_vm3 = vcmask 64512   ;;  %s2298_s26 = sshll.u32 %s3503_s13, 5 }
  0x13   : > { %v352_v1 = vld [vmem:[%s2896_s27] sm:$0xff]  ;;  %v353_v2 = vld [vmem:[%s2896_s27 + $0x8] sm:$0xff] }
  0x14   : > { %v360_v3 = vld [vmem:[%s2896_s27 + $0x60] sm:$0xff]  ;;  %v368_v4 = vpack.c.bf16 %v353_v2, %v352_v1  ;;  %v361_v5 = vld [vmem:[%s2896_s27 + $0x68] sm:$0xff] }
  0x15   : > { %v2902_v6 = vpack.c.bf16 %v361_v5, %v360_v3 }
  0x16   : > { %2576 = vmatprep.mubr.msk.bf16.mxu0 %vm392_vm0, %v368_v4 }
  0x17   : > { %2584 = vmatprep.mubr.msk.bf16.mxu1 %vm392_vm0, %v2902_v6 }
  0x83   : > { %v217_v10 = vpop.permute.xlu0 %216 }
  0x84   : > { %v2925_v14 = vadd.f32 1.0, %v217_v10 }
  0x86   : > { %v220_v17 = vmul.f32 %v219_v7, %v2925_v14  ;;  %v233_v18 = vmul.f32 %v2302_v8, %v2925_v14  ;;  %v245_v19 = vmul.f32 %v2303_v9, %v2925_v14  ;;  %v257_v20 = vmul.f32 %v2304_v11, %v2925_v14  ;;  %v2309_v9 = vld [vmem:[%s3489_s2 + $0x20] sm:$0xf] }
  0x87   : > { %v269_v21 = vmul.f32 %v2305_v12, %v2925_v14  ;;  %v281_v22 = vmul.f32 %v2306_v13, %v2925_v14  ;;  %v293_v23 = vmul.f32 %v2307_v15, %v2925_v14  ;;  %v305_v24 = vmul.f32 %v2308_v16, %v2925_v14 }
  0x88   : > { %v221_v25 = vmul.f32 %v220_v17, %v220_v17  ;;  %v234_v26 = vmul.f32 %v233_v18, %v233_v18  ;;  %v246_v27 = vmul.f32 %v245_v19, %v245_v19  ;;  %v258_v28 = vmul.f32 %v257_v20, %v257_v20 }
  0x89   : > { %v270_v29 = vmul.f32 %v269_v21, %v269_v21  ;;  %v282_v30 = vmul.f32 %v281_v22, %v281_v22  ;;  %v294_v31 = vmul.f32 %v293_v23, %v293_v23  ;;  %v306_v32 = vmul.f32 %v305_v24, %v305_v24 }
  0x8a   : > { %v223_v33 = vsel %vm222_vm1, %v221_v25, 0.0  ;;  %v235_v34 = vsel %vm222_vm1, %v234_v26, 0.0  ;;  %v247_v35 = vsel %vm222_vm1, %v246_v27, 0.0  ;;  %v259_v36 = vsel %vm222_vm1, %v258_v28, 0.0 }
  0x8b   : > { %v224_v37 = vrot.slane %v223_v33, 4  ;;  %v236_v38 = vrot.slane %v235_v34, 4  ;;  %v248_v39 = vrot.slane %v247_v35, 4  ;;  %v260_v40 = vrot.slane %v259_v36, 4 }
  0x8c   : > { %v271_v41 = vsel %vm222_vm1, %v270_v29, 0.0  ;;  %v283_v42 = vsel %vm222_vm1, %v282_v30, 0.0  ;;  %v295_v43 = vsel %vm222_vm1, %v294_v31, 0.0  ;;  %v307_v44 = vsel %vm222_vm1, %v306_v32, 0.0 }
  0x8d   : > { %v225_v45 = vadd.f32 %v224_v37, %v223_v33  ;;  %v237_v46 = vadd.f32 %v236_v38, %v235_v34  ;;  %v249_v47 = vadd.f32 %v248_v39, %v247_v35  ;;  %v261_v48 = vadd.f32 %v260_v40, %v259_v36 }
  0x8e   : > { %v272_v49 = vrot.slane %v271_v41, 4  ;;  %v284_v50 = vrot.slane %v283_v42, 4  ;;  %v296_v51 = vrot.slane %v295_v43, 4  ;;  %v308_v52 = vrot.slane %v307_v44, 4 }
  0x8f   : > { %v226_v53 = vrot.slane %v225_v45, 2  ;;  %v238_v54 = vrot.slane %v237_v46, 2  ;;  %v250_v55 = vrot.slane %v249_v47, 2  ;;  %v262_v56 = vrot.slane %v261_v48, 2 }
  0x90   : > { %v273_v57 = vadd.f32 %v272_v49, %v271_v41  ;;  %v285_v58 = vadd.f32 %v284_v50, %v283_v42  ;;  %v297_v59 = vadd.f32 %v296_v51, %v295_v43  ;;  %v309_v3 = vadd.f32 %v308_v52, %v307_v44  ;;  %v2441_v49 = vld [vmem:[%s3489_s2 + $0x1c] sm:$0xf] }
  0x91   : > { %v227_v60 = vadd.f32 %v226_v53, %v225_v45  ;;  %v239_v61 = vadd.f32 %v238_v54, %v237_v46  ;;  %v251_v62 = vadd.f32 %v250_v55, %v249_v47  ;;  %v263_v63 = vadd.f32 %v262_v56, %v261_v48  ;;  %v346_v46 = vld [vmem:[%s3489_s2] sm:$0xf]  ;;  %v2319_v47 = vld [vmem:[%s3489_s2 + $0x4] sm:$0xf]  ;;  %v2328_v48 = vld [vmem:[%s3489_s2 + $0x8] sm:$0xf] }
  0x92   : > { %v274_v0 = vrot.slane %v273_v57, 2  ;;  %v286_v1 = vrot.slane %v285_v58, 2  ;;  %v298_v2 = vrot.slane %v297_v59, 2  ;;  %v310_v16 = vrot.slane %v309_v3, 2  ;;  %v2337_v53 = vld [vmem:[%s3489_s2 + $0xc] sm:$0xf] }
  0x93   : > { %v228_v4 = vrot.slane %v227_v60, 1  ;;  %v240_v5 = vrot.slane %v239_v61, 1  ;;  %v252_v7 = vrot.slane %v251_v62, 1  ;;  %v264_v12 = vrot.slane %v263_v63, 1  ;;  %v354_v55 = vld [vmem:[%s2896_s27 + $0x18] sm:$0xff]  ;;  %v355_v56 = vld [vmem:[%s2896_s27 + $0x20] sm:$0xff] }
  0x94   : > { %v275_v8 = vadd.f32 %v274_v0, %v273_v57  ;;  %v287_v13 = vadd.f32 %v286_v1, %v285_v58  ;;  %v299_v15 = vadd.f32 %v298_v2, %v297_v59  ;;  %v317_v20 = vmul.f32 %v2309_v9, %v2925_v14  ;;  %v2364_v57 = vld [vmem:[%s3489_s2 + $0x10] sm:$0xf]  ;;  %v2466_v0 = vld [vmem:[%s3489_s2 + $0x20] sm:$0xf] }
  0x95   : > { %v229_v10 = vadd.f32 %v228_v4, %v227_v60  ;;  %v241_v11 = vadd.f32 %v240_v5, %v239_v61  ;;  %v253_v18 = vadd.f32 %v252_v7, %v251_v62  ;;  %v265_v22 = vadd.f32 %v264_v12, %v263_v63  ;;  %v362_v62 = vld [vmem:[%s2896_s27 + $0x78] sm:$0xff]  ;;  %v363_v63 = vld [vmem:[%s2896_s27 + $0x80] sm:$0xff]  ;;  %v356_v9 = vld [vmem:[%s2896_s27 + $0x30] sm:$0xff] }
  0x96   : > { %v276_v19 = vrot.slane %v275_v8, 1  ;;  %v288_v23 = vrot.slane %v287_v13, 1  ;;  %v318_v24 = vmul.f32 %v317_v20, %v317_v20  ;;  %v311_v25 = vadd.f32 %v310_v16, %v309_v3 }
  0x97   : > { %v242_v17 = vadd.f32 %v241_v11, %v229_v10  ;;  %v300_v28 = vrot.slane %v299_v15, 1  ;;  %v347_v50 = vmul.f32 %v346_v46, %v2925_v14  ;;  %v551_v51 = vmul.f32 %v2319_v47, %v2925_v14  ;;  %v756_v46 = vld [vmem:[%s2896_s27 + $0x1a] sm:$0xff]  ;;  %v757_v47 = vld [vmem:[%s2896_s27 + $0x22] sm:$0xff] }
  0x98   : > { %v277_v27 = vadd.f32 %v276_v19, %v275_v8  ;;  %v319_v29 = vsel %vm222_vm1, %v318_v24, 0.0  ;;  %v289_v32 = vadd.f32 %v288_v23, %v287_v13  ;;  %v312_v33 = vrot.slane %v311_v25, 1  ;;  %v365_v19 = vld [vmem:[%s2896_s27 + $0x98] sm:$0xff] }
  0x99   : > { %v254_v21 = vadd.f32 %v253_v18, %v242_v17  ;;  %v320_v30 = vrot.slane %v319_v29, 4  ;;  %v301_v36 = vadd.f32 %v300_v28, %v299_v15  ;;  %v751_v52 = vmul.f32 %v2328_v48, %v2925_v14  ;;  %v357_v17 = vld [vmem:[%s2896_s27 + $0x38] sm:$0xff]  ;;  %v364_v18 = vld [vmem:[%s2896_s27 + $0x90] sm:$0xff] }
  0x9a   : > { %v313_v39 = vadd.f32 %v312_v33, %v311_v25  ;;  %v1757_v58 = vmul.f32 %v2441_v49, %v2925_v14  ;;  %v951_v1 = vmul.f32 %v2337_v53, %v2925_v14  ;;  %v2990_v4 = vpack.c.bf16 %v355_v56, %v354_v55  ;;  %v554_v33 = vld [vmem:[%s2896_s27 + $0x1] sm:$0xff] }
  0x9b   : > { %v266_v26 = vadd.f32 %v265_v22, %v254_v21  ;;  %v321_v34 = vadd.f32 %v320_v30, %v319_v29  ;;  %v1154_v5 = vmul.f32 %v2364_v57, %v2925_v14  ;;  %v2993_v7 = vpack.c.bf16 %v363_v63, %v362_v62  ;;  %v358_v29 = vld [vmem:[%s2896_s27 + $0x48] sm:$0xff]  ;;  %v359_v30 = vld [vmem:[%s2896_s27 + $0x50] sm:$0xff]  ;;  %v559_v57 = vld [vmem:[%s2896_s27 + $0x39] sm:$0xff] }
  0x9c   : > { %v1957_v11 = vmul.f32 %v2466_v0, %v2925_v14  ;;  %v3014_v22 = vpack.c.bf16 %v357_v17, %v356_v9  ;;  %v3016_v23 = vpack.c.bf16 %v365_v19, %v364_v18  ;;  %v2832_v48 = vmov 0.0   ;;  %v560_v0 = vld [vmem:[%s2896_s27 + $0x49] sm:$0xff]  ;;  %v564_v17 = vld [vmem:[%s2896_s27 + $0x79] sm:$0xff]  ;;  %v565_v18 = vld [vmem:[%s2896_s27 + $0x81] sm:$0xff] }
  0x9d   : > { %v278_v31 = vadd.f32 %v277_v27, %v266_v26  ;;  %v322_v37 = vrot.slane %v321_v34, 2  ;;  %340 = vst.msk [vmem:[#allocation2 + $0x50] sm:$0xff] %vm329_vm3, %v2832_v48  ;;  %330 = vst.msk [vmem:[#allocation2] sm:$0xff] %vm329_vm3, %v2832_v48  ;;  %v3089_v53 = vpack.c.bf16 %v757_v47, %v756_v46  ;;  %v762_v9 = vld [vmem:[%s2896_s27 + $0x62] sm:$0xff]  ;;  %v764_v19 = vld [vmem:[%s2896_s27 + $0x7a] sm:$0xff] }
  0x9e   : > { %331 = vst.msk [vmem:[#allocation2 + $0x8] sm:$0xff] %vm329_vm3, %v2832_v48  ;;  %332 = vst.msk [vmem:[#allocation2 + $0x10] sm:$0xff] %vm329_vm3, %v2832_v48  ;;  %v2481_v47 = vld [vmem:[%s2896_s27 + $0xda] sm:$0xff] }
  0x9f   : > { %v290_v35 = vadd.f32 %v289_v32, %v278_v31  ;;  %v323_v40 = vadd.f32 %v322_v37, %v321_v34  ;;  %v366_v31 = vld [vmem:[%s2896_s27 + $0xa8] sm:$0xff]  ;;  %v367_v32 = vld [vmem:[%s2896_s27 + $0xb0] sm:$0xff]  ;;  %333 = vst.msk [vmem:[#allocation2 + $0x18] sm:$0xff] %vm329_vm3, %v2832_v48  ;;  %334 = vst.msk [vmem:[#allocation2 + $0x20] sm:$0xff] %vm329_vm3, %v2832_v48 }
  0xa0   : > { %v755_v37 = vld [vmem:[%s2896_s27 + $0xa] sm:$0xff]  ;;  %335 = vst.msk [vmem:[#allocation2 + $0x28] sm:$0xff] %vm329_vm3, %v2832_v48  ;;  %336 = vst.msk [vmem:[#allocation2 + $0x30] sm:$0xff] %vm329_vm3, %v2832_v48 }
  0xa1   : > { %v302_v38 = vadd.f32 %v301_v36, %v290_v35  ;;  %v324_v42 = vrot.slane %v323_v40, 1  ;;  %v555_v35 = vld [vmem:[%s2896_s27 + $0x9] sm:$0xff]  ;;  %337 = vst.msk [vmem:[#allocation2 + $0x38] sm:$0xff] %vm329_vm3, %v2832_v48  ;;  %338 = vst.msk [vmem:[#allocation2 + $0x40] sm:$0xff] %vm329_vm3, %v2832_v48 }
  0xa2   : > { %v754_v36 = vld [vmem:[%s2896_s27 + $0x2] sm:$0xff]  ;;  %339 = vst.msk [vmem:[#allocation2 + $0x48] sm:$0xff] %vm329_vm3, %v2832_v48  ;;  %341 = vst.msk [vmem:[#allocation2 + $0x58] sm:$0xff] %vm329_vm3, %v2832_v48 }
  0xa3   : > { %v314_v41 = vadd.f32 %v313_v39, %v302_v38  ;;  %v325_v43 = vadd.f32 %v324_v42, %v323_v40  ;;  %v3050_v38 = vpack.c.bf16 %v359_v30, %v358_v29  ;;  %v3052_v39 = vpack.c.bf16 %v367_v32, %v366_v31  ;;  %v2389_v42 = vld [vmem:[%s3489_s2 + $0x14] sm:$0xf]  ;;  %342 = vst.msk [vmem:[#allocation2 + $0x60] sm:$0xff] %vm329_vm3, %v2832_v48 }
  0xa4   : > { %v570_v40 = vpack.c.bf16 %v555_v35, %v554_v33  ;;  %343 = vst.msk [vmem:[#allocation2 + $0x68] sm:$0xff] %vm329_vm3, %v2832_v48  ;;  %344 = vst.msk [vmem:[#allocation2 + $0x70] sm:$0xff] %vm329_vm3, %v2832_v48  ;;  %v1354_v49 = vmul.f32 %v2389_v42, %v2925_v14  ;;  %v3145_v29 = vpack.c.bf16 %v565_v18, %v564_v17  ;;  %v568_v33 = vld [vmem:[%s2896_s27 + $0xa9] sm:$0xff]  ;;  %v569_v35 = vld [vmem:[%s2896_s27 + $0xb1] sm:$0xff] }
  0xa5   : > { %v326_v44 = vadd.f32 %v325_v43, %v314_v41  ;;  %v770_v41 = vpack.c.bf16 %v755_v37, %v754_v36  ;;  %v2414_v43 = vld [vmem:[%s3489_s2 + $0x18] sm:$0xf]  ;;  %345 = vst.msk [vmem:[#allocation2 + $0x78] sm:$0xff] %vm329_vm3, %v2832_v48  ;;  %v768_v36 = vld [vmem:[%s2896_s27 + $0xaa] sm:$0xff]  ;;  %v2482_v48 = vld [vmem:[%s2896_s27 + $0xe2] sm:$0xff] }
  0xa6   : > { %v769_v37 = vld [vmem:[%s2896_s27 + $0xb2] sm:$0xff] }
  0xa7   : > { %v327_v45 = vadd.f32 1e-08, %v326_v44  ;;  %v556_v44 = vld [vmem:[%s2896_s27 + $0x19] sm:$0xff] }
  0xa9   : > { %2790 = vrsqrt.f32 %v327_v45  ;;  %v557_v45 = vld [vmem:[%s2896_s27 + $0x21] sm:$0xff] }
  0xaa   : > { %v388_v18 = vld [vmem:[#allocation2 + $0x60] sm:$0xff] }
  0xb6   : > { %v2972_v54 = vpop.eup %2790 }
  0xb7   : > { %v348_v59 = vmul.f32 %v2972_v54, %v347_v50  ;;  %v552_v60 = vmul.f32 %v2972_v54, %v551_v51  ;;  %v752_v61 = vmul.f32 %v2972_v54, %v751_v52  ;;  %v1758_v2 = vmul.f32 %v2972_v54, %v1757_v58  ;;  %v558_v51 = vld [vmem:[%s2896_s27 + $0x31] sm:$0xff] }
  0xb8   : > { %v952_v8 = vmul.f32 %v2972_v54, %v951_v1  ;;  %v1155_v16 = vmul.f32 %v2972_v54, %v1154_v5  ;;  %v1958_v20 = vmul.f32 %v2972_v54, %v1957_v11  ;;  %v1554_v50 = vmul.f32 %v2414_v43, %v2925_v14  ;;  %v758_v58 = vld [vmem:[%s2896_s27 + $0x32] sm:$0xff]  ;;  %v562_v5 = vld [vmem:[%s2896_s27 + $0x61] sm:$0xff]  ;;  %v763_v11 = vld [vmem:[%s2896_s27 + $0x6a] sm:$0xff] }
  0xb9   : > { %v349_v3 = vpack.c.bf16 %v348_v59, %v348_v59  ;;  %v2997_v10 = vpack.c.bf16 %v1758_v2, %v1758_v2  ;;  %v553_v13 = vpack.c.bf16 %v552_v60, %v552_v60  ;;  %v753_v15 = vpack.c.bf16 %v752_v61, %v752_v61  ;;  %v759_v59 = vld [vmem:[%s2896_s27 + $0x3a] sm:$0xff]  ;;  %v561_v1 = vld [vmem:[%s2896_s27 + $0x51] sm:$0xff] }
  0xba   : > { %v3018_v24 = vpack.c.bf16 %v1958_v20, %v1958_v20  ;;  %v3026_v27 = vpack.c.bf16 %v952_v8, %v952_v8  ;;  %v3028_v28 = vpack.c.bf16 %v1155_v16, %v1155_v16  ;;  %v571_v52 = vpack.c.bf16 %v557_v45, %v556_v44  ;;  %v760_v2 = vld [vmem:[%s2896_s27 + $0x4a] sm:$0xff]  ;;  %v765_v20 = vld [vmem:[%s2896_s27 + $0x82] sm:$0xff] }
  0xbb   : > { %2738 = vmatprep.subr.msk.bf16.mxu0 %vm417_vm2, %v349_v3  ;;  %2739 = vmatprep.subr.msk.bf16.mxu1 %vm417_vm2, %v349_v3  ;;  %v419_v12 = vsel %vm417_vm2, %v349_v3, 0  ;;  %v3012_v21 = vsel %vm417_vm2, %v2997_v10, 0  ;;  %v619_v25 = vsel %vm417_vm2, %v553_v13, 0  ;;  %v819_v26 = vsel %vm417_vm2, %v753_v15, 0  ;;  %v761_v3 = vld [vmem:[%s2896_s27 + $0x52] sm:$0xff]  ;;  %v563_v8 = vld [vmem:[%s2896_s27 + $0x69] sm:$0xff] }
  0xbc   : > { %2575 = vmatpush3.bf16.msra.mxu0 %v419_v12  ;;  %2737 = vmatpush3.bf16.msra.mxu1 %v419_v12  ;;  %v3037_v34 = vsel %vm417_vm2, %v3018_v24, 0  ;;  %v1355_v55 = vmul.f32 %v2972_v54, %v1354_v49  ;;  %v1555_v56 = vmul.f32 %v2972_v54, %v1554_v50  ;;  %v3096_v60 = vpack.c.bf16 %v559_v57, %v558_v51  ;;  %v2380_v44 = vld [vmem:[%s2896_s27 + $0xc9] sm:$0xff]  ;;  %v376_v57 = vld [vmem:[#allocation2] sm:$0xff] }
  0xbd   : > { %2740 = vmatprep.subr.msk.bf16.mxu1 %vm417_vm2, %v553_v13  ;;  %2741 = vmatprep.subr.msk.bf16.mxu0 %vm417_vm2, %v753_v15  ;;  %v3098_v61 = vpack.c.bf16 %v759_v59, %v758_v58  ;;  %v1022_v14 = vsel %vm417_vm2, %v3026_v27, 0  ;;  %v1222_v54 = vsel %vm417_vm2, %v3028_v28, 0  ;;  %v3121_v12 = vpack.c.bf16 %v561_v1, %v560_v0  ;;  %v386_v51 = vld [vmem:[#allocation2 + $0x50] sm:$0xff]  ;;  %v385_v1 = vld [vmem:[#allocation2 + $0x48] sm:$0xff] }
  0xbe   : > { %v1356_v62 = vpack.c.bf16 %v1355_v55, %v1355_v55  ;;  %v1556_v63 = vpack.c.bf16 %v1555_v56, %v1555_v56  ;;  %v3123_v13 = vpack.c.bf16 %v761_v3, %v760_v2  ;;  %v3125_v15 = vpack.c.bf16 %v563_v8, %v562_v5  ;;  %v384_v55 = vld [vmem:[#allocation2 + $0x40] sm:$0xff]  ;;  %v377_v3 = vld [vmem:[#allocation2 + $0x8] sm:$0xff] }
  0xbf   : > { %2577 = vmatmul.mubr.msk.bf16.vlgmr.msra.gmra.mxu0 %vm392_vm0, %v2990_v4  ;;  %2585 = vmatmul.mubr.msk.bf16.vlgmr.msra.gmra.mxu1 %vm392_vm0, %v2993_v7  ;;  %v3127_v16 = vpack.c.bf16 %v763_v11, %v762_v9  ;;  %v3147_v30 = vpack.c.bf16 %v765_v20, %v764_v19  ;;  %v1983_v50 = vpack.c.bf16 %v2482_v48, %v2481_v47  ;;  %v390_v11 = vld [vmem:[#allocation2 + $0x70] sm:$0xff]  ;;  %v380_v20 = vld [vmem:[#allocation2 + $0x20] sm:$0xff] }
  0xc0   : > { %2593 = vmatpush3.bf16.msra.mxu1 %v619_v25  ;;  %2611 = vmatpush3.bf16.msra.mxu0 %v819_v26  ;;  %v566_v25 = vld [vmem:[%s2896_s27 + $0x91] sm:$0xff]  ;;  %v567_v26 = vld [vmem:[%s2896_s27 + $0x99] sm:$0xff]  ;;  %v1422_v42 = vsel %vm417_vm2, %v1356_v62, 0  ;;  %v1625_v43 = vsel %vm417_vm2, %v1556_v63, 0 }
  0xc1   : > { %2742 = vmatprep.subr.msk.bf16.mxu1 %vm417_vm2, %v3026_v27  ;;  %2743 = vmatprep.subr.msk.bf16.mxu0 %vm417_vm2, %v3028_v28  ;;  %v766_v27 = vld [vmem:[%s2896_s27 + $0x92] sm:$0xff]  ;;  %v767_v28 = vld [vmem:[%s2896_s27 + $0x9a] sm:$0xff]  ;;  %v3149_v31 = vpack.c.bf16 %v567_v26, %v566_v25 }
  0xc2   : > { %2580 = vmatprep.mubr.msk.bf16.mxu0 %vm392_vm0, %v3014_v22  ;;  %2588 = vmatprep.mubr.msk.bf16.mxu1 %vm392_vm0, %v3016_v23  ;;  %v3151_v32 = vpack.c.bf16 %v767_v28, %v766_v27  ;;  %v391_v28 = vld [vmem:[#allocation2 + $0x78] sm:$0xff] }
  0xc7   : > { %2581 = vmatmul.mubr.msk.bf16.gmra.mxu0 %vm392_vm0, %v3050_v38  ;;  %2589 = vmatmul.mubr.msk.bf16.gmra.mxu1 %vm392_vm0, %v3052_v39 }
  0xc8   : > { %2594 = vmatprep.mubr.msk.bf16.mxu1 %vm392_vm0, %v570_v40  ;;  %2612 = vmatprep.mubr.msk.bf16.mxu0 %vm392_vm0, %v770_v41  ;;  %v3165_v40 = vpack.c.bf16 %v569_v35, %v568_v33  ;;  %v3167_v41 = vpack.c.bf16 %v769_v37, %v768_v36  ;;  %v389_v35 = vld [vmem:[#allocation2 + $0x68] sm:$0xff] }
  0xc9   : > { %v381_v37 = vld [vmem:[#allocation2 + $0x28] sm:$0xff] }
  0xcf   : > { %2595 = vmatmul.mubr.msk.bf16.vlgmr.msra.gmra.mxu1 %vm392_vm0, %v571_v52  ;;  %2613 = vmatmul.mubr.msk.bf16.vlgmr.msra.gmra.mxu0 %vm392_vm0, %v3089_v53 }
  0xd0   : > { %2629 = vmatpush3.bf16.msra.mxu1 %v1022_v14  ;;  %2647 = vmatpush3.bf16.msra.mxu0 %v1222_v54  ;;  %v379_v54 = vld [vmem:[#allocation2 + $0x18] sm:$0xff] }
  0xd1   : > { %2744 = vmatprep.subr.msk.bf16.mxu1 %vm417_vm2, %v1356_v62  ;;  %2745 = vmatprep.subr.msk.bf16.mxu0 %vm417_vm2, %v1556_v63 }
  0xd2   : > { %2598 = vmatprep.mubr.msk.bf16.mxu1 %vm392_vm0, %v3096_v60  ;;  %2616 = vmatprep.mubr.msk.bf16.mxu0 %vm392_vm0, %v3098_v61 }
  0xd7   : > { %2599 = vmatmul.mubr.msk.bf16.gmra.mxu1 %vm392_vm0, %v3121_v12  ;;  %2617 = vmatmul.mubr.msk.bf16.gmra.mxu0 %vm392_vm0, %v3123_v13 }
  0xd8   : > { %2602 = vmatprep.mubr.msk.bf16.mxu1 %vm392_vm0, %v3125_v15  ;;  %2620 = vmatprep.mubr.msk.bf16.mxu0 %vm392_vm0, %v3127_v16 }
  0xdf   : > { %2603 = vmatmul.mubr.msk.bf16.gmra.mxu1 %vm392_vm0, %v3145_v29  ;;  %2621 = vmatmul.mubr.msk.bf16.gmra.mxu0 %vm392_vm0, %v3147_v30 }
  0xe0   : > { %2606 = vmatprep.mubr.msk.bf16.mxu1 %vm392_vm0, %v3149_v31  ;;  %2624 = vmatprep.mubr.msk.bf16.mxu0 %vm392_vm0, %v3151_v32 }
  0xe7   : > { %2607 = vmatmul.mubr.msk.bf16.gmra.mxu1 %vm392_vm0, %v3165_v40  ;;  %2625 = vmatmul.mubr.msk.bf16.gmra.mxu0 %vm392_vm0, %v3167_v41 }
  0xe8   : > { %2630 = vmatprep.mubr.msk.bf16.mxu1 %vm392_vm0, %v2990_v4  ;;  %2648 = vmatprep.mubr.msk.bf16.mxu0 %vm392_vm0, %v571_v52  ;;  %v2354_v4 = vld [vmem:[%s2896_s27 + $0xc0] sm:$0xff]  ;;  %v378_v52 = vld [vmem:[#allocation2 + $0x10] sm:$0xff] }
  0xef   : > { %2631 = vmatmul.mubr.msk.bf16.vlgmr.msra.gmra.mxu1 %vm392_vm0, %v3014_v22  ;;  %2649 = vmatmul.mubr.msk.bf16.vlgmr.msra.gmra.mxu0 %vm392_vm0, %v3096_v60 }
  0xf0   : > { %2665 = vmatpush3.bf16.msra.mxu1 %v1422_v42  ;;  %2683 = vmatpush3.bf16.msra.mxu0 %v1625_v43 }
  0xf1   : > { %2746 = vmatprep.subr.msk.bf16.mxu1 %vm417_vm2, %v2997_v10  ;;  %2747 = vmatprep.subr.msk.bf16.mxu0 %vm417_vm2, %v3018_v24  ;;  %v2355_v10 = vld [vmem:[%s2896_s27 + $0xc8] sm:$0xff] }
  0xf2   : > { %2634 = vmatprep.mubr.msk.bf16.mxu1 %vm392_vm0, %v3050_v38  ;;  %2652 = vmatprep.mubr.msk.bf16.mxu0 %vm392_vm0, %v3121_v12  ;;  %v2379_v24 = vld [vmem:[%s2896_s27 + $0xc1] sm:$0xff]  ;;  %v980_v45 = vpack.c.bf16 %v2355_v10, %v2354_v4 }
  0xf3   : > { %v1180_v46 = vpack.c.bf16 %v2380_v44, %v2379_v24 }
  0xf7   : > { %2635 = vmatmul.mubr.msk.bf16.gmra.mxu1 %vm392_vm0, %v2902_v6  ;;  %2653 = vmatmul.mubr.msk.bf16.gmra.mxu0 %vm392_vm0, %v3125_v15 }
  0xf8   : > { %2638 = vmatprep.mubr.msk.bf16.mxu1 %vm392_vm0, %v2993_v7  ;;  %2656 = vmatprep.mubr.msk.bf16.mxu0 %vm392_vm0, %v3145_v29 }
  0xff   : > { %2639 = vmatmul.mubr.msk.bf16.gmra.mxu1 %vm392_vm0, %v3016_v23  ;;  %2657 = vmatmul.mubr.msk.bf16.gmra.mxu0 %vm392_vm0, %v3149_v31 }
 0x100   : > { %2642 = vmatprep.mubr.msk.bf16.mxu1 %vm392_vm0, %v3052_v39  ;;  %2660 = vmatprep.mubr.msk.bf16.mxu0 %vm392_vm0, %v3165_v40 }
 0x107   : > { %2643 = vmatmul.mubr.msk.bf16.gmra.mxu1 %vm392_vm0, %v980_v45  ;;  %2661 = vmatmul.mubr.msk.bf16.gmra.mxu0 %vm392_vm0, %v1180_v46 }
 0x108   : > { %2666 = vmatprep.mubr.msk.bf16.mxu1 %vm392_vm0, %v3089_v53  ;;  %2684 = vmatprep.mubr.msk.bf16.mxu0 %vm392_vm0, %v3014_v22  ;;  %v2432_v22 = vld [vmem:[%s2896_s27 + $0xe0] sm:$0xff] }
 0x10f   : > { %2667 = vmatmul.mubr.msk.bf16.vlgmr.msra.gmra.mxu1 %vm392_vm0, %v3098_v61  ;;  %2685 = vmatmul.mubr.msk.bf16.vlgmr.msra.gmra.mxu0 %vm392_vm0, %v3050_v38 }
 0x110   : > { %2701 = vmatpush3.bf16.msra.mxu1 %v3012_v21  ;;  %2719 = vmatpush3.bf16.msra.mxu0 %v3037_v34  ;;  %v2404_v21 = vld [vmem:[%s2896_s27 + $0xc2] sm:$0xff] }
 0x111   : > { %2670 = vmatprep.mubr.msk.bf16.mxu1 %vm392_vm0, %v3123_v13  ;;  %2688 = vmatprep.mubr.msk.bf16.mxu0 %vm392_vm0, %v2902_v6  ;;  %v2405_v6 = vld [vmem:[%s2896_s27 + $0xca] sm:$0xff] }
 0x112   : > { %v1380_v34 = vpack.c.bf16 %v2405_v6, %v2404_v21 }
 0x117   : > { %2671 = vmatmul.mubr.msk.bf16.gmra.mxu1 %vm392_vm0, %v3127_v16  ;;  %2689 = vmatmul.mubr.msk.bf16.gmra.mxu0 %vm392_vm0, %v2993_v7  ;;  %v2431_v7 = vld [vmem:[%s2896_s27 + $0xd8] sm:$0xff] }
 0x118   : > { %2674 = vmatprep.mubr.msk.bf16.mxu1 %vm392_vm0, %v3147_v30  ;;  %2692 = vmatprep.mubr.msk.bf16.mxu0 %vm392_vm0, %v3016_v23  ;;  %v1583_v38 = vpack.c.bf16 %v2432_v22, %v2431_v7  ;;  %v2456_v23 = vld [vmem:[%s2896_s27 + $0xd9] sm:$0xff] }
 0x11f   : > { %2675 = vmatmul.mubr.msk.bf16.gmra.mxu1 %vm392_vm0, %v3151_v32  ;;  %2693 = vmatmul.mubr.msk.bf16.gmra.mxu0 %vm392_vm0, %v3052_v39  ;;  %v2457_v39 = vld [vmem:[%s2896_s27 + $0xe1] sm:$0xff]  ;;  %s2297_s27 = sshll.u32 %s2814_s12, 4 }
 0x120   : > { %2678 = vmatprep.mubr.msk.bf16.mxu1 %vm392_vm0, %v3167_v41  ;;  %2696 = vmatprep.mubr.msk.bf16.mxu0 %vm392_vm0, %v980_v45  ;;  %v1783_v49 = vpack.c.bf16 %v2457_v39, %v2456_v23  ;;  %p3391_p6 = scmp.lt.s32.totalorder %s2297_s27, 31 }
 0x122   : > { %s3505_s27 = smov (!%p3391_p6, %s2297_s27), 31 }
 0x123   : > { %s204_s12 = sadd.s32 %s2298_s26, %s3505_s27 }
 0x124   : > { %s2299_s13 = sshll.u32 %s204_s12, 3 }
 0x125   : > { %s3417_s30 = scalar_lea.vmem %s3490_s3, %s2299_s13 }
 0x127   : > { %2679 = vmatmul.mubr.msk.bf16.gmra.mxu1 %vm392_vm0, %v1380_v34  ;;  %2697 = vmatmul.mubr.msk.bf16.gmra.mxu0 %vm392_vm0, %v1583_v38 }
 0x128   : > { %2702 = vmatprep.mubr.msk.bf16.mxu1 %vm392_vm0, %v3096_v60  ;;  %2720 = vmatprep.mubr.msk.bf16.mxu0 %vm392_vm0, %v3098_v61  ;;  %v387_v61 = vld [vmem:[#allocation2 + $0x58] sm:$0xff] }
 0x12f   : > { %2703 = vmatmul.mubr.msk.bf16.vlgmr.msra.gmra.mxu1 %vm392_vm0, %v3121_v12  ;;  %2721 = vmatmul.mubr.msk.bf16.vlgmr.msra.gmra.mxu0 %vm392_vm0, %v3123_v13  ;;  %v382_v13 = vld [vmem:[#allocation2 + $0x30] sm:$0xff] }
 0x130   : > { %2706 = vmatprep.mubr.msk.bf16.mxu1 %vm392_vm0, %v3125_v15  ;;  %2724 = vmatprep.mubr.msk.bf16.mxu0 %vm392_vm0, %v3127_v16 }
 0x137   : > { %2707 = vmatmul.mubr.msk.bf16.gmra.mxu1 %vm392_vm0, %v3145_v29  ;;  %2725 = vmatmul.mubr.msk.bf16.gmra.mxu0 %vm392_vm0, %v3147_v30  ;;  %v383_v30 = vld [vmem:[#allocation2 + $0x38] sm:$0xff] }
 0x138   : > { %2710 = vmatprep.mubr.msk.bf16.mxu1 %vm392_vm0, %v3149_v31  ;;  %2728 = vmatprep.mubr.msk.bf16.mxu0 %vm392_vm0, %v3151_v32 }
 0x13f   : > { %2711 = vmatmul.mubr.msk.bf16.gmra.mxu1 %vm392_vm0, %v3165_v40  ;;  %2729 = vmatmul.mubr.msk.bf16.gmra.mxu0 %vm392_vm0, %v3167_v41 }
 0x140   : > { %2714 = vmatprep.mubr.msk.bf16.mxu1 %vm392_vm0, %v1180_v46  ;;  %2732 = vmatprep.mubr.msk.bf16.mxu0 %vm392_vm0, %v1380_v34 }
 0x147   : > { %2715 = vmatmul.mubr.msk.bf16.gmra.mxu1 %vm392_vm0, %v1783_v49  ;;  %2733 = vmatmul.mubr.msk.bf16.gmra.mxu0 %vm392_vm0, %v1983_v50 }
 0x17f   : > { %v2586_v53 = vpop.f32.mrf.mxu1  ;;  %v2578_v56 = vpop.f32.mrf.mxu0 }
 0x180   : > { %v528_v58 = vadd.f32 %v2586_v53, %v386_v51  ;;  %v520_v59 = vadd.f32 %v2578_v56, %v378_v52 }
 0x181   : > { %v487_v60 = vpop.f32.mrf.mxu1  ;;  %v455_v14 = vpop.f32.mrf.mxu0 }
 0x182   : > { %544 = vst.msk [vmem:[#allocation2 + $0x50] sm:$0xff] %vm329_vm3, %v528_v58  ;;  %v526_v62 = vadd.f32 %v487_v60, %v384_v55  ;;  %536 = vst.msk [vmem:[#allocation2 + $0x10] sm:$0xff] %vm329_vm3, %v520_v59  ;;  %v518_v63 = vadd.f32 %v455_v14, %v376_v57 }
 0x183   : > { %v2587_v0 = vpop.f32.mrf.mxu1  ;;  %v2579_v2 = vpop.f32.mrf.mxu0 }
 0x184   : > { %542 = vst.msk [vmem:[#allocation2 + $0x40] sm:$0xff] %vm329_vm3, %v526_v62  ;;  %v529_v5 = vadd.f32 %v2587_v0, %v387_v61  ;;  %534 = vst.msk [vmem:[#allocation2] sm:$0xff] %vm329_vm3, %v518_v63  ;;  %v521_v8 = vadd.f32 %v2579_v2, %v379_v54 }
 0x185   : > { %v490_v9 = vpop.f32.mrf.mxu1  ;;  %v458_v12 = vpop.f32.mrf.mxu0 }
 0x186   : > { %545 = vst.msk [vmem:[#allocation2 + $0x58] sm:$0xff] %vm329_vm3, %v529_v5  ;;  %v527_v15 = vadd.f32 %v490_v9, %v385_v1  ;;  %537 = vst.msk [vmem:[#allocation2 + $0x18] sm:$0xff] %vm329_vm3, %v521_v8  ;;  %v519_v16 = vadd.f32 %v458_v12, %v377_v3 }
 0x187   : > { %v2590_v17 = vpop.f32.mrf.mxu1  ;;  %v2582_v19 = vpop.f32.mrf.mxu0 }
 0x188   : > { %543 = vst.msk [vmem:[#allocation2 + $0x48] sm:$0xff] %vm329_vm3, %v527_v15  ;;  %v532_v25 = vadd.f32 %v2590_v17, %v390_v11  ;;  %535 = vst.msk [vmem:[#allocation2 + $0x8] sm:$0xff] %vm329_vm3, %v519_v16  ;;  %v524_v26 = vadd.f32 %v2582_v19, %v382_v13 }
 0x189   : > { %v503_v27 = vpop.f32.mrf.mxu1  ;;  %v471_v29 = vpop.f32.mrf.mxu0  ;;  %v580_v43 = vld [vmem:[#allocation2 + $0x10] sm:$0xff] }
 0x18a   : > { %548 = vst.msk [vmem:[#allocation2 + $0x70] sm:$0xff] %vm329_vm3, %v532_v25  ;;  %v530_v31 = vadd.f32 %v503_v27, %v388_v18  ;;  %540 = vst.msk [vmem:[#allocation2 + $0x30] sm:$0xff] %vm329_vm3, %v524_v26  ;;  %v522_v32 = vadd.f32 %v471_v29, %v380_v20  ;;  %v588_v13 = vld [vmem:[#allocation2 + $0x50] sm:$0xff] }
 0x18b   : > { %v2591_v33 = vpop.f32.mrf.mxu1  ;;  %v2583_v36 = vpop.f32.mrf.mxu0  ;;  %v578_v45 = vld [vmem:[#allocation2] sm:$0xff] }
 0x18c   : > { %546 = vst.msk [vmem:[#allocation2 + $0x60] sm:$0xff] %vm329_vm3, %v530_v31  ;;  %v533_v40 = vadd.f32 %v2591_v33, %v391_v28  ;;  %538 = vst.msk [vmem:[#allocation2 + $0x20] sm:$0xff] %vm329_vm3, %v522_v32  ;;  %v525_v41 = vadd.f32 %v2583_v36, %v383_v30  ;;  %v586_v20 = vld [vmem:[#allocation2 + $0x40] sm:$0xff] }
 0x18d   : > { %v506_v42 = vpop.f32.mrf.mxu1  ;;  %v474_v4 = vpop.f32.mrf.mxu0  ;;  %v581_v7 = vld [vmem:[#allocation2 + $0x18] sm:$0xff] }
 0x18e   : > { %549 = vst.msk [vmem:[#allocation2 + $0x78] sm:$0xff] %vm329_vm3, %v533_v40  ;;  %v531_v10 = vadd.f32 %v506_v42, %v389_v35  ;;  %541 = vst.msk [vmem:[#allocation2 + $0x38] sm:$0xff] %vm329_vm3, %v525_v41  ;;  %v523_v24 = vadd.f32 %v474_v4, %v381_v37  ;;  %v589_v30 = vld [vmem:[#allocation2 + $0x58] sm:$0xff] }
 0x18f   : > { %v2596_v44 = vpop.f32.mrf.mxu1  ;;  %v2614_v46 = vpop.f32.mrf.mxu0  ;;  %v579_v47 = vld [vmem:[#allocation2 + $0x8] sm:$0xff] }
 0x190   : > { %547 = vst.msk [vmem:[#allocation2 + $0x68] sm:$0xff] %vm329_vm3, %v531_v10  ;;  %v720_v21 = vadd.f32 %v2596_v44, %v580_v43  ;;  %539 = vst.msk [vmem:[#allocation2 + $0x28] sm:$0xff] %vm329_vm3, %v523_v24  ;;  %v587_v37 = vld [vmem:[#allocation2 + $0x48] sm:$0xff] }
 0x191   : > { %v655_v6 = vpop.f32.mrf.mxu1  ;;  %v855_v22 = vpop.f32.mrf.mxu0  ;;  %v584_v49 = vld [vmem:[#allocation2 + $0x30] sm:$0xff] }
 0x192   : > { %736 = vst.msk [vmem:[#allocation2 + $0x10] sm:$0xff] %vm329_vm3, %v720_v21  ;;  %v718_v34 = vadd.f32 %v655_v6, %v578_v45  ;;  %v592_v10 = vld [vmem:[#allocation2 + $0x70] sm:$0xff] }
 0x193   : > { %v2597_v38 = vpop.f32.mrf.mxu1  ;;  %v2615_v23 = vpop.f32.mrf.mxu0  ;;  %v582_v53 = vld [vmem:[#allocation2 + $0x20] sm:$0xff] }
 0x194   : > { %734 = vst.msk [vmem:[#allocation2] sm:$0xff] %vm329_vm3, %v718_v34  ;;  %v721_v39 = vadd.f32 %v2597_v38, %v581_v7  ;;  %v590_v6 = vld [vmem:[#allocation2 + $0x60] sm:$0xff] }
 0x195   : > { %v658_v48 = vpop.f32.mrf.mxu1  ;;  %v858_v50 = vpop.f32.mrf.mxu0  ;;  %v585_v59 = vld [vmem:[#allocation2 + $0x38] sm:$0xff] }
 0x196   : > { %737 = vst.msk [vmem:[#allocation2 + $0x18] sm:$0xff] %vm329_vm3, %v721_v39  ;;  %v719_v51 = vadd.f32 %v658_v48, %v579_v47  ;;  %v593_v39 = vld [vmem:[#allocation2 + $0x78] sm:$0xff] }
 0x197   : > { %v2600_v52 = vpop.f32.mrf.mxu1  ;;  %v2618_v55 = vpop.f32.mrf.mxu0  ;;  %v583_v3 = vld [vmem:[#allocation2 + $0x28] sm:$0xff] }
 0x198   : > { %735 = vst.msk [vmem:[#allocation2 + $0x8] sm:$0xff] %vm329_vm3, %v719_v51  ;;  %v724_v56 = vadd.f32 %v2600_v52, %v584_v49  ;;  %v591_v52 = vld [vmem:[#allocation2 + $0x68] sm:$0xff] }
 0x199   : > { %v780_v57 = vld [vmem:[#allocation2 + $0x10] sm:$0xff]  ;;  %v671_v58 = vpop.f32.mrf.mxu1  ;;  %v871_v60 = vpop.f32.mrf.mxu0 }
 0x19a   : > { %v920_v61 = vadd.f32 %v2614_v46, %v780_v57  ;;  %740 = vst.msk [vmem:[#allocation2 + $0x30] sm:$0xff] %vm329_vm3, %v724_v56  ;;  %v722_v14 = vadd.f32 %v671_v58, %v582_v53 }
 0x19b   : > { %v778_v54 = vld [vmem:[#allocation2] sm:$0xff]  ;;  %v2601_v62 = vpop.f32.mrf.mxu1  ;;  %v2619_v63 = vpop.f32.mrf.mxu0 }
 0x19c   : > { %936 = vst.msk [vmem:[#allocation2 + $0x10] sm:$0xff] %vm329_vm3, %v920_v61  ;;  %v918_v0 = vadd.f32 %v855_v22, %v778_v54  ;;  %738 = vst.msk [vmem:[#allocation2 + $0x20] sm:$0xff] %vm329_vm3, %v722_v14  ;;  %v725_v1 = vadd.f32 %v2601_v62, %v585_v59 }
 0x19d   : > { %v781_v2 = vld [vmem:[#allocation2 + $0x18] sm:$0xff]  ;;  %v674_v5 = vpop.f32.mrf.mxu1  ;;  %v874_v8 = vpop.f32.mrf.mxu0 }
 0x19e   : > { %934 = vst.msk [vmem:[#allocation2] sm:$0xff] %vm329_vm3, %v918_v0  ;;  %v921_v9 = vadd.f32 %v2615_v23, %v781_v2  ;;  %741 = vst.msk [vmem:[#allocation2 + $0x38] sm:$0xff] %vm329_vm3, %v725_v1  ;;  %v723_v11 = vadd.f32 %v674_v5, %v583_v3 }
 0x19f   : > { %v779_v12 = vld [vmem:[#allocation2 + $0x8] sm:$0xff]  ;;  %v2604_v15 = vpop.f32.mrf.mxu1  ;;  %v2622_v16 = vpop.f32.mrf.mxu0 }
 0x1a0   : > { %937 = vst.msk [vmem:[#allocation2 + $0x18] sm:$0xff] %vm329_vm3, %v921_v9  ;;  %v919_v17 = vadd.f32 %v858_v50, %v779_v12  ;;  %739 = vst.msk [vmem:[#allocation2 + $0x28] sm:$0xff] %vm329_vm3, %v723_v11  ;;  %v728_v18 = vadd.f32 %v2604_v15, %v588_v13 }
 0x1a1   : > { %v784_v19 = vld [vmem:[#allocation2 + $0x30] sm:$0xff]  ;;  %v687_v25 = vpop.f32.mrf.mxu1  ;;  %v887_v26 = vpop.f32.mrf.mxu0 }
 0x1a2   : > { %935 = vst.msk [vmem:[#allocation2 + $0x8] sm:$0xff] %vm329_vm3, %v919_v17  ;;  %v924_v27 = vadd.f32 %v2618_v55, %v784_v19  ;;  %744 = vst.msk [vmem:[#allocation2 + $0x50] sm:$0xff] %vm329_vm3, %v728_v18  ;;  %v726_v28 = vadd.f32 %v687_v25, %v586_v20 }
 0x1a3   : > { %v782_v29 = vld [vmem:[#allocation2 + $0x20] sm:$0xff]  ;;  %v2605_v31 = vpop.f32.mrf.mxu1  ;;  %v2623_v32 = vpop.f32.mrf.mxu0  ;;  %v983_v59 = vld [vmem:[#allocation2 + $0x10] sm:$0xff] }
 0x1a4   : > { %940 = vst.msk [vmem:[#allocation2 + $0x30] sm:$0xff] %vm329_vm3, %v924_v27  ;;  %v922_v33 = vadd.f32 %v871_v60, %v782_v29  ;;  %742 = vst.msk [vmem:[#allocation2 + $0x40] sm:$0xff] %vm329_vm3, %v726_v28  ;;  %v729_v35 = vadd.f32 %v2605_v31, %v589_v30 }
 0x1a5   : > { %v785_v36 = vld [vmem:[#allocation2 + $0x38] sm:$0xff]  ;;  %v690_v40 = vpop.f32.mrf.mxu1  ;;  %v890_v41 = vpop.f32.mrf.mxu0 }
 0x1a6   : > { %938 = vst.msk [vmem:[#allocation2 + $0x20] sm:$0xff] %vm329_vm3, %v922_v33  ;;  %v925_v42 = vadd.f32 %v2619_v63, %v785_v36  ;;  %745 = vst.msk [vmem:[#allocation2 + $0x58] sm:$0xff] %vm329_vm3, %v729_v35  ;;  %v727_v43 = vadd.f32 %v690_v40, %v587_v37  ;;  %v981_v63 = vld [vmem:[#allocation2] sm:$0xff] }
 0x1a7   : > { %v783_v4 = vld [vmem:[#allocation2 + $0x28] sm:$0xff]  ;;  %v2608_v24 = vpop.f32.mrf.mxu1  ;;  %v2626_v44 = vpop.f32.mrf.mxu0 }
 0x1a8   : > { %941 = vst.msk [vmem:[#allocation2 + $0x38] sm:$0xff] %vm329_vm3, %v925_v42  ;;  %v923_v45 = vadd.f32 %v874_v8, %v783_v4  ;;  %743 = vst.msk [vmem:[#allocation2 + $0x48] sm:$0xff] %vm329_vm3, %v727_v43  ;;  %v732_v46 = vadd.f32 %v2608_v24, %v592_v10  ;;  %v984_v8 = vld [vmem:[#allocation2 + $0x18] sm:$0xff] }
 0x1a9   : > { %v788_v21 = vld [vmem:[#allocation2 + $0x50] sm:$0xff]  ;;  %v703_v7 = vpop.f32.mrf.mxu1  ;;  %v903_v22 = vpop.f32.mrf.mxu0 }
 0x1aa   : > { %939 = vst.msk [vmem:[#allocation2 + $0x28] sm:$0xff] %vm329_vm3, %v923_v45  ;;  %v928_v34 = vadd.f32 %v2622_v16, %v788_v21  ;;  %748 = vst.msk [vmem:[#allocation2 + $0x70] sm:$0xff] %vm329_vm3, %v732_v46  ;;  %v730_v38 = vadd.f32 %v703_v7, %v590_v6  ;;  %v982_v16 = vld [vmem:[#allocation2 + $0x8] sm:$0xff] }
 0x1ab   : > { %v786_v23 = vld [vmem:[#allocation2 + $0x40] sm:$0xff]  ;;  %v2609_v47 = vpop.f32.mrf.mxu1  ;;  %v2627_v48 = vpop.f32.mrf.mxu0 }
 0x1ac   : > { %944 = vst.msk [vmem:[#allocation2 + $0x50] sm:$0xff] %vm329_vm3, %v928_v34  ;;  %v926_v49 = vadd.f32 %v887_v26, %v786_v23  ;;  %746 = vst.msk [vmem:[#allocation2 + $0x60] sm:$0xff] %vm329_vm3, %v730_v38  ;;  %v733_v50 = vadd.f32 %v2609_v47, %v593_v39  ;;  %v987_v26 = vld [vmem:[#allocation2 + $0x30] sm:$0xff] }
 0x1ad   : > { %v789_v51 = vld [vmem:[#allocation2 + $0x58] sm:$0xff]  ;;  %v706_v53 = vpop.f32.mrf.mxu1  ;;  %v906_v55 = vpop.f32.mrf.mxu0 }
 0x1ae   : > { %942 = vst.msk [vmem:[#allocation2 + $0x40] sm:$0xff] %vm329_vm3, %v926_v49  ;;  %v929_v56 = vadd.f32 %v2623_v32, %v789_v51  ;;  %749 = vst.msk [vmem:[#allocation2 + $0x78] sm:$0xff] %vm329_vm3, %v733_v50  ;;  %v731_v57 = vadd.f32 %v706_v53, %v591_v52  ;;  %v985_v32 = vld [vmem:[#allocation2 + $0x20] sm:$0xff] }
 0x1af   : > { %v787_v58 = vld [vmem:[#allocation2 + $0x48] sm:$0xff]  ;;  %v2632_v60 = vpop.f32.mrf.mxu1  ;;  %v2650_v61 = vpop.f32.mrf.mxu0 }
 0x1b0   : > { %945 = vst.msk [vmem:[#allocation2 + $0x58] sm:$0xff] %vm329_vm3, %v929_v56  ;;  %v927_v14 = vadd.f32 %v890_v41, %v787_v58  ;;  %747 = vst.msk [vmem:[#allocation2 + $0x68] sm:$0xff] %vm329_vm3, %v731_v57  ;;  %v1123_v54 = vadd.f32 %v2632_v60, %v983_v59  ;;  %v988_v41 = vld [vmem:[#allocation2 + $0x38] sm:$0xff] }
 0x1b1   : > { %v792_v62 = vld [vmem:[#allocation2 + $0x70] sm:$0xff]  ;;  %v1058_v0 = vpop.f32.mrf.mxu1  ;;  %v1258_v1 = vpop.f32.mrf.mxu0 }
 0x1b2   : > { %943 = vst.msk [vmem:[#allocation2 + $0x48] sm:$0xff] %vm329_vm3, %v927_v14  ;;  %v932_v2 = vadd.f32 %v2626_v44, %v792_v62  ;;  %1139 = vst.msk [vmem:[#allocation2 + $0x10] sm:$0xff] %vm329_vm3, %v1123_v54  ;;  %v1121_v3 = vadd.f32 %v1058_v0, %v981_v63  ;;  %v986_v44 = vld [vmem:[#allocation2 + $0x28] sm:$0xff] }
 0x1b3   : > { %v790_v5 = vld [vmem:[#allocation2 + $0x60] sm:$0xff]  ;;  %v2633_v9 = vpop.f32.mrf.mxu1  ;;  %v2651_v11 = vpop.f32.mrf.mxu0 }
 0x1b4   : > { %948 = vst.msk [vmem:[#allocation2 + $0x70] sm:$0xff] %vm329_vm3, %v932_v2  ;;  %v930_v12 = vadd.f32 %v903_v22, %v790_v5  ;;  %1137 = vst.msk [vmem:[#allocation2] sm:$0xff] %vm329_vm3, %v1121_v3  ;;  %v1124_v13 = vadd.f32 %v2633_v9, %v984_v8  ;;  %v991_v22 = vld [vmem:[#allocation2 + $0x50] sm:$0xff] }
 0x1b5   : > { %v793_v15 = vld [vmem:[#allocation2 + $0x78] sm:$0xff]  ;;  %v1061_v17 = vpop.f32.mrf.mxu1  ;;  %v1261_v18 = vpop.f32.mrf.mxu0 }
 0x1b6   : > { %946 = vst.msk [vmem:[#allocation2 + $0x60] sm:$0xff] %vm329_vm3, %v930_v12  ;;  %v933_v19 = vadd.f32 %v2627_v48, %v793_v15  ;;  %1140 = vst.msk [vmem:[#allocation2 + $0x18] sm:$0xff] %vm329_vm3, %v1124_v13  ;;  %v1122_v20 = vadd.f32 %v1061_v17, %v982_v16  ;;  %v989_v48 = vld [vmem:[#allocation2 + $0x40] sm:$0xff] }
 0x1b7   : > { %v791_v25 = vld [vmem:[#allocation2 + $0x68] sm:$0xff]  ;;  %v2636_v27 = vpop.f32.mrf.mxu1  ;;  %v2654_v28 = vpop.f32.mrf.mxu0 }
 0x1b8   : > { %949 = vst.msk [vmem:[#allocation2 + $0x78] sm:$0xff] %vm329_vm3, %v933_v19  ;;  %v931_v29 = vadd.f32 %v906_v55, %v791_v25  ;;  %1138 = vst.msk [vmem:[#allocation2 + $0x8] sm:$0xff] %vm329_vm3, %v1122_v20  ;;  %v1127_v30 = vadd.f32 %v2636_v27, %v987_v26  ;;  %v992_v55 = vld [vmem:[#allocation2 + $0x58] sm:$0xff] }
 0x1b9   : > { %v1183_v31 = vld [vmem:[#allocation2 + $0x10] sm:$0xff]  ;;  %v1074_v33 = vpop.f32.mrf.mxu1  ;;  %v1274_v35 = vpop.f32.mrf.mxu0 }
 0x1ba   : > { %947 = vst.msk [vmem:[#allocation2 + $0x68] sm:$0xff] %vm329_vm3, %v931_v29  ;;  %v1323_v36 = vadd.f32 %v2650_v61, %v1183_v31  ;;  %1143 = vst.msk [vmem:[#allocation2 + $0x30] sm:$0xff] %vm329_vm3, %v1127_v30  ;;  %v1125_v37 = vadd.f32 %v1074_v33, %v985_v32  ;;  %v990_v61 = vld [vmem:[#allocation2 + $0x48] sm:$0xff] }
 0x1bb   : > { %v1181_v40 = vld [vmem:[#allocation2] sm:$0xff]  ;;  %v2637_v42 = vpop.f32.mrf.mxu1  ;;  %v2655_v43 = vpop.f32.mrf.mxu0 }
 0x1bc   : > { %1339 = vst.msk [vmem:[#allocation2 + $0x10] sm:$0xff] %vm329_vm3, %v1323_v36  ;;  %v1321_v4 = vadd.f32 %v1258_v1, %v1181_v40  ;;  %1141 = vst.msk [vmem:[#allocation2 + $0x20] sm:$0xff] %vm329_vm3, %v1125_v37  ;;  %v1128_v10 = vadd.f32 %v2637_v42, %v988_v41  ;;  %v995_v1 = vld [vmem:[#allocation2 + $0x70] sm:$0xff] }
 0x1bd   : > { %v1184_v24 = vld [vmem:[#allocation2 + $0x18] sm:$0xff]  ;;  %v1077_v45 = vpop.f32.mrf.mxu1  ;;  %v1277_v46 = vpop.f32.mrf.mxu0 }
 0x1be   : > { %1337 = vst.msk [vmem:[#allocation2] sm:$0xff] %vm329_vm3, %v1321_v4  ;;  %v1324_v21 = vadd.f32 %v2651_v11, %v1184_v24  ;;  %1144 = vst.msk [vmem:[#allocation2 + $0x38] sm:$0xff] %vm329_vm3, %v1128_v10  ;;  %v1126_v6 = vadd.f32 %v1077_v45, %v986_v44  ;;  %v993_v11 = vld [vmem:[#allocation2 + $0x60] sm:$0xff] }
 0x1bf   : > { %v1182_v7 = vld [vmem:[#allocation2 + $0x8] sm:$0xff]  ;;  %v2640_v34 = vpop.f32.mrf.mxu1  ;;  %v2658_v38 = vpop.f32.mrf.mxu0 }
 0x1c0   : > { %1340 = vst.msk [vmem:[#allocation2 + $0x18] sm:$0xff] %vm329_vm3, %v1324_v21  ;;  %v1322_v23 = vadd.f32 %v1261_v18, %v1182_v7  ;;  %1142 = vst.msk [vmem:[#allocation2 + $0x28] sm:$0xff] %vm329_vm3, %v1126_v6  ;;  %v1131_v39 = vadd.f32 %v2640_v34, %v991_v22  ;;  %v996_v18 = vld [vmem:[#allocation2 + $0x78] sm:$0xff] }
 0x1c1   : > { %v1187_v47 = vld [vmem:[#allocation2 + $0x30] sm:$0xff]  ;;  %v1090_v49 = vpop.f32.mrf.mxu1  ;;  %v1290_v50 = vpop.f32.mrf.mxu0 }
 0x1c2   : > { %1338 = vst.msk [vmem:[#allocation2 + $0x8] sm:$0xff] %vm329_vm3, %v1322_v23  ;;  %v1327_v51 = vadd.f32 %v2654_v28, %v1187_v47  ;;  %1147 = vst.msk [vmem:[#allocation2 + $0x50] sm:$0xff] %vm329_vm3, %v1131_v39  ;;  %v1129_v52 = vadd.f32 %v1090_v49, %v989_v48  ;;  %v994_v28 = vld [vmem:[#allocation2 + $0x68] sm:$0xff] }
 0x1c3   : > { %v1185_v53 = vld [vmem:[#allocation2 + $0x20] sm:$0xff]  ;;  %v2641_v56 = vpop.f32.mrf.mxu1  ;;  %v2659_v57 = vpop.f32.mrf.mxu0 }
 0x1c4   : > { %1343 = vst.msk [vmem:[#allocation2 + $0x30] sm:$0xff] %vm329_vm3, %v1327_v51  ;;  %v1325_v58 = vadd.f32 %v1274_v35, %v1185_v53  ;;  %1145 = vst.msk [vmem:[#allocation2 + $0x40] sm:$0xff] %vm329_vm3, %v1129_v52  ;;  %v1132_v59 = vadd.f32 %v2641_v56, %v992_v55  ;;  %v1383_v35 = vld [vmem:[#allocation2 + $0x10] sm:$0xff] }
 0x1c5   : > { %v1188_v60 = vld [vmem:[#allocation2 + $0x38] sm:$0xff]  ;;  %v1093_v14 = vpop.f32.mrf.mxu1  ;;  %v1293_v54 = vpop.f32.mrf.mxu0 }
 0x1c6   : > { %1341 = vst.msk [vmem:[#allocation2 + $0x20] sm:$0xff] %vm329_vm3, %v1325_v58  ;;  %v1328_v62 = vadd.f32 %v2655_v43, %v1188_v60  ;;  %1148 = vst.msk [vmem:[#allocation2 + $0x58] sm:$0xff] %vm329_vm3, %v1132_v59  ;;  %v1130_v63 = vadd.f32 %v1093_v14, %v990_v61  ;;  %v1381_v43 = vld [vmem:[#allocation2] sm:$0xff] }
 0x1c7   : > { %v1186_v0 = vld [vmem:[#allocation2 + $0x28] sm:$0xff]  ;;  %v2644_v2 = vpop.f32.mrf.mxu1  ;;  %v2662_v3 = vpop.f32.mrf.mxu0 }
 0x1c8   : > { %1344 = vst.msk [vmem:[#allocation2 + $0x38] sm:$0xff] %vm329_vm3, %v1328_v62  ;;  %v1326_v5 = vadd.f32 %v1277_v46, %v1186_v0  ;;  %1146 = vst.msk [vmem:[#allocation2 + $0x48] sm:$0xff] %vm329_vm3, %v1130_v63  ;;  %v1135_v8 = vadd.f32 %v2644_v2, %v995_v1  ;;  %v1384_v46 = vld [vmem:[#allocation2 + $0x18] sm:$0xff] }
 0x1c9   : > { %v1191_v9 = vld [vmem:[#allocation2 + $0x50] sm:$0xff]  ;;  %v1106_v12 = vpop.f32.mrf.mxu1  ;;  %v1306_v13 = vpop.f32.mrf.mxu0 }
 0x1ca   : > { %1342 = vst.msk [vmem:[#allocation2 + $0x28] sm:$0xff] %vm329_vm3, %v1326_v5  ;;  %v1331_v15 = vadd.f32 %v2658_v38, %v1191_v9  ;;  %1151 = vst.msk [vmem:[#allocation2 + $0x70] sm:$0xff] %vm329_vm3, %v1135_v8  ;;  %v1133_v16 = vadd.f32 %v1106_v12, %v993_v11  ;;  %v1382_v38 = vld [vmem:[#allocation2 + $0x8] sm:$0xff] }
 0x1cb   : > { %v1189_v17 = vld [vmem:[#allocation2 + $0x40] sm:$0xff]  ;;  %v2645_v19 = vpop.f32.mrf.mxu1  ;;  %v2663_v20 = vpop.f32.mrf.mxu0 }
 0x1cc   : > { %1347 = vst.msk [vmem:[#allocation2 + $0x50] sm:$0xff] %vm329_vm3, %v1331_v15  ;;  %v1329_v25 = vadd.f32 %v1290_v50, %v1189_v17  ;;  %1149 = vst.msk [vmem:[#allocation2 + $0x60] sm:$0xff] %vm329_vm3, %v1133_v16  ;;  %v1136_v26 = vadd.f32 %v2645_v19, %v996_v18  ;;  %v1387_v50 = vld [vmem:[#allocation2 + $0x30] sm:$0xff] }
 0x1cd   : > { %v1192_v27 = vld [vmem:[#allocation2 + $0x58] sm:$0xff]  ;;  %v1109_v29 = vpop.f32.mrf.mxu1  ;;  %v1309_v30 = vpop.f32.mrf.mxu0 }
 0x1ce   : > { %1345 = vst.msk [vmem:[#allocation2 + $0x40] sm:$0xff] %vm329_vm3, %v1329_v25  ;;  %v1332_v31 = vadd.f32 %v2659_v57, %v1192_v27  ;;  %1152 = vst.msk [vmem:[#allocation2 + $0x78] sm:$0xff] %vm329_vm3, %v1136_v26  ;;  %v1134_v32 = vadd.f32 %v1109_v29, %v994_v28  ;;  %v1385_v57 = vld [vmem:[#allocation2 + $0x20] sm:$0xff] }
 0x1cf   : > { %v1190_v33 = vld [vmem:[#allocation2 + $0x48] sm:$0xff]  ;;  %v2668_v36 = vpop.f32.mrf.mxu1  ;;  %v2686_v37 = vpop.f32.mrf.mxu0 }
 0x1d0   : > { %1348 = vst.msk [vmem:[#allocation2 + $0x58] sm:$0xff] %vm329_vm3, %v1332_v31  ;;  %v1330_v40 = vadd.f32 %v1293_v54, %v1190_v33  ;;  %1150 = vst.msk [vmem:[#allocation2 + $0x68] sm:$0xff] %vm329_vm3, %v1134_v32  ;;  %v1523_v41 = vadd.f32 %v2668_v36, %v1383_v35  ;;  %v1388_v54 = vld [vmem:[#allocation2 + $0x38] sm:$0xff] }
 0x1d1   : > { %v1195_v42 = vld [vmem:[#allocation2 + $0x70] sm:$0xff]  ;;  %v1458_v4 = vpop.f32.mrf.mxu1  ;;  %v1661_v10 = vpop.f32.mrf.mxu0 }
 0x1d2   : > { %1346 = vst.msk [vmem:[#allocation2 + $0x48] sm:$0xff] %vm329_vm3, %v1330_v40  ;;  %v1335_v24 = vadd.f32 %v2662_v3, %v1195_v42  ;;  %1539 = vst.msk [vmem:[#allocation2 + $0x10] sm:$0xff] %vm329_vm3, %v1523_v41  ;;  %v1521_v44 = vadd.f32 %v1458_v4, %v1381_v43  ;;  %v1386_v3 = vld [vmem:[#allocation2 + $0x28] sm:$0xff] }
 0x1d3   : > { %v1193_v45 = vld [vmem:[#allocation2 + $0x60] sm:$0xff]  ;;  %v2669_v21 = vpop.f32.mrf.mxu1  ;;  %v2687_v6 = vpop.f32.mrf.mxu0 }
 0x1d4   : > { %1351 = vst.msk [vmem:[#allocation2 + $0x70] sm:$0xff] %vm329_vm3, %v1335_v24  ;;  %v1333_v7 = vadd.f32 %v1306_v13, %v1193_v45  ;;  %1537 = vst.msk [vmem:[#allocation2] sm:$0xff] %vm329_vm3, %v1521_v44  ;;  %v1524_v22 = vadd.f32 %v2669_v21, %v1384_v46  ;;  %v1391_v13 = vld [vmem:[#allocation2 + $0x50] sm:$0xff] }
 0x1d5   : > { %v1196_v34 = vld [vmem:[#allocation2 + $0x78] sm:$0xff]  ;;  %v1461_v23 = vpop.f32.mrf.mxu1  ;;  %v1664_v39 = vpop.f32.mrf.mxu0 }
 0x1d6   : > { %1349 = vst.msk [vmem:[#allocation2 + $0x60] sm:$0xff] %vm329_vm3, %v1333_v7  ;;  %v1336_v47 = vadd.f32 %v2663_v20, %v1196_v34  ;;  %1540 = vst.msk [vmem:[#allocation2 + $0x18] sm:$0xff] %vm329_vm3, %v1524_v22  ;;  %v1522_v48 = vadd.f32 %v1461_v23, %v1382_v38  ;;  %v1389_v20 = vld [vmem:[#allocation2 + $0x40] sm:$0xff] }
 0x1d7   : > { %v1194_v49 = vld [vmem:[#allocation2 + $0x68] sm:$0xff]  ;;  %v2672_v51 = vpop.f32.mrf.mxu1  ;;  %v2690_v52 = vpop.f32.mrf.mxu0 }
 0x1d8   : > { %1352 = vst.msk [vmem:[#allocation2 + $0x78] sm:$0xff] %vm329_vm3, %v1336_v47  ;;  %v1334_v53 = vadd.f32 %v1309_v30, %v1194_v49  ;;  %1538 = vst.msk [vmem:[#allocation2 + $0x8] sm:$0xff] %vm329_vm3, %v1522_v48  ;;  %v1527_v55 = vadd.f32 %v2672_v51, %v1387_v50  ;;  %v1392_v30 = vld [vmem:[#allocation2 + $0x58] sm:$0xff] }
 0x1d9   : > { %v1586_v56 = vld [vmem:[#allocation2 + $0x10] sm:$0xff]  ;;  %v1474_v58 = vpop.f32.mrf.mxu1  ;;  %v1677_v59 = vpop.f32.mrf.mxu0 }
 0x1da   : > { %1350 = vst.msk [vmem:[#allocation2 + $0x68] sm:$0xff] %vm329_vm3, %v1334_v53  ;;  %v1726_v60 = vadd.f32 %v2686_v37, %v1586_v56  ;;  %1543 = vst.msk [vmem:[#allocation2 + $0x30] sm:$0xff] %vm329_vm3, %v1527_v55  ;;  %v1525_v61 = vadd.f32 %v1474_v58, %v1385_v57  ;;  %v1390_v37 = vld [vmem:[#allocation2 + $0x48] sm:$0xff] }
 0x1db   : > { %v1584_v14 = vld [vmem:[#allocation2] sm:$0xff]  ;;  %v2673_v62 = vpop.f32.mrf.mxu1  ;;  %v2691_v63 = vpop.f32.mrf.mxu0 }
 0x1dc   : > { %1742 = vst.msk [vmem:[#allocation2 + $0x10] sm:$0xff] %vm329_vm3, %v1726_v60  ;;  %v1724_v0 = vadd.f32 %v1661_v10, %v1584_v14  ;;  %1541 = vst.msk [vmem:[#allocation2 + $0x20] sm:$0xff] %vm329_vm3, %v1525_v61  ;;  %v1528_v1 = vadd.f32 %v2673_v62, %v1388_v54  ;;  %v1395_v10 = vld [vmem:[#allocation2 + $0x70] sm:$0xff] }
 0x1dd   : > { %v1587_v2 = vld [vmem:[#allocation2 + $0x18] sm:$0xff]  ;;  %v1477_v5 = vpop.f32.mrf.mxu1  ;;  %v1680_v8 = vpop.f32.mrf.mxu0 }
 0x1de   : > { %1740 = vst.msk [vmem:[#allocation2] sm:$0xff] %vm329_vm3, %v1724_v0  ;;  %v1727_v9 = vadd.f32 %v2687_v6, %v1587_v2  ;;  %1544 = vst.msk [vmem:[#allocation2 + $0x38] sm:$0xff] %vm329_vm3, %v1528_v1  ;;  %v1526_v11 = vadd.f32 %v1477_v5, %v1386_v3  ;;  %v1393_v6 = vld [vmem:[#allocation2 + $0x60] sm:$0xff] }
 0x1df   : > { %v1585_v12 = vld [vmem:[#allocation2 + $0x8] sm:$0xff]  ;;  %v2676_v15 = vpop.f32.mrf.mxu1  ;;  %v2694_v16 = vpop.f32.mrf.mxu0 }
 0x1e0   : > { %1743 = vst.msk [vmem:[#allocation2 + $0x18] sm:$0xff] %vm329_vm3, %v1727_v9  ;;  %v1725_v17 = vadd.f32 %v1664_v39, %v1585_v12  ;;  %1542 = vst.msk [vmem:[#allocation2 + $0x28] sm:$0xff] %vm329_vm3, %v1526_v11  ;;  %v1531_v18 = vadd.f32 %v2676_v15, %v1391_v13  ;;  %v1396_v39 = vld [vmem:[#allocation2 + $0x78] sm:$0xff] }
 0x1e1   : > { %v1590_v19 = vld [vmem:[#allocation2 + $0x30] sm:$0xff]  ;;  %v1490_v25 = vpop.f32.mrf.mxu1  ;;  %v1693_v26 = vpop.f32.mrf.mxu0 }
 0x1e2   : > { %1741 = vst.msk [vmem:[#allocation2 + $0x8] sm:$0xff] %vm329_vm3, %v1725_v17  ;;  %v1730_v27 = vadd.f32 %v2690_v52, %v1590_v19  ;;  %1547 = vst.msk [vmem:[#allocation2 + $0x50] sm:$0xff] %vm329_vm3, %v1531_v18  ;;  %v1529_v28 = vadd.f32 %v1490_v25, %v1389_v20  ;;  %v1394_v52 = vld [vmem:[#allocation2 + $0x68] sm:$0xff] }
 0x1e3   : > { %v1588_v29 = vld [vmem:[#allocation2 + $0x20] sm:$0xff]  ;;  %v2677_v31 = vpop.f32.mrf.mxu1  ;;  %v2695_v32 = vpop.f32.mrf.mxu0 }
 0x1e4   : > { %1746 = vst.msk [vmem:[#allocation2 + $0x30] sm:$0xff] %vm329_vm3, %v1730_v27  ;;  %v1728_v33 = vadd.f32 %v1677_v59, %v1588_v29  ;;  %1545 = vst.msk [vmem:[#allocation2 + $0x40] sm:$0xff] %vm329_vm3, %v1529_v28  ;;  %v1532_v35 = vadd.f32 %v2677_v31, %v1392_v30  ;;  %v1786_v59 = vld [vmem:[#allocation2 + $0x10] sm:$0xff] }
 0x1e5   : > { %v1591_v36 = vld [vmem:[#allocation2 + $0x38] sm:$0xff]  ;;  %v1493_v40 = vpop.f32.mrf.mxu1  ;;  %v1696_v41 = vpop.f32.mrf.mxu0 }
 0x1e6   : > { %1744 = vst.msk [vmem:[#allocation2 + $0x20] sm:$0xff] %vm329_vm3, %v1728_v33  ;;  %v1731_v42 = vadd.f32 %v2691_v63, %v1591_v36  ;;  %1548 = vst.msk [vmem:[#allocation2 + $0x58] sm:$0xff] %vm329_vm3, %v1532_v35  ;;  %v1530_v43 = vadd.f32 %v1493_v40, %v1390_v37  ;;  %v1784_v63 = vld [vmem:[#allocation2] sm:$0xff] }
 0x1e7   : > { %v1589_v4 = vld [vmem:[#allocation2 + $0x28] sm:$0xff]  ;;  %v2680_v24 = vpop.f32.mrf.mxu1  ;;  %v2698_v44 = vpop.f32.mrf.mxu0 }
 0x1e8   : > { %1747 = vst.msk [vmem:[#allocation2 + $0x38] sm:$0xff] %vm329_vm3, %v1731_v42  ;;  %v1729_v45 = vadd.f32 %v1680_v8, %v1589_v4  ;;  %1546 = vst.msk [vmem:[#allocation2 + $0x48] sm:$0xff] %vm329_vm3, %v1530_v43  ;;  %v1535_v46 = vadd.f32 %v2680_v24, %v1395_v10  ;;  %v1787_v8 = vld [vmem:[#allocation2 + $0x18] sm:$0xff] }
 0x1e9   : > { %v1594_v21 = vld [vmem:[#allocation2 + $0x50] sm:$0xff]  ;;  %v1506_v7 = vpop.f32.mrf.mxu1  ;;  %v1709_v22 = vpop.f32.mrf.mxu0 }
 0x1ea   : > { %1745 = vst.msk [vmem:[#allocation2 + $0x28] sm:$0xff] %vm329_vm3, %v1729_v45  ;;  %v1734_v34 = vadd.f32 %v2694_v16, %v1594_v21  ;;  %1551 = vst.msk [vmem:[#allocation2 + $0x70] sm:$0xff] %vm329_vm3, %v1535_v46  ;;  %v1533_v38 = vadd.f32 %v1506_v7, %v1393_v6  ;;  %v1785_v16 = vld [vmem:[#allocation2 + $0x8] sm:$0xff] }
 0x1eb   : > { %v1592_v23 = vld [vmem:[#allocation2 + $0x40] sm:$0xff]  ;;  %v2681_v47 = vpop.f32.mrf.mxu1  ;;  %v2699_v48 = vpop.f32.mrf.mxu0 }
 0x1ec   : > { %1750 = vst.msk [vmem:[#allocation2 + $0x50] sm:$0xff] %vm329_vm3, %v1734_v34  ;;  %v1732_v49 = vadd.f32 %v1693_v26, %v1592_v23  ;;  %1549 = vst.msk [vmem:[#allocation2 + $0x60] sm:$0xff] %vm329_vm3, %v1533_v38  ;;  %v1536_v50 = vadd.f32 %v2681_v47, %v1396_v39  ;;  %v1790_v26 = vld [vmem:[#allocation2 + $0x30] sm:$0xff] }
 0x1ed   : > { %v1595_v51 = vld [vmem:[#allocation2 + $0x58] sm:$0xff]  ;;  %v1509_v53 = vpop.f32.mrf.mxu1  ;;  %v1712_v55 = vpop.f32.mrf.mxu0 }
 0x1ee   : > { %1748 = vst.msk [vmem:[#allocation2 + $0x40] sm:$0xff] %vm329_vm3, %v1732_v49  ;;  %v1735_v56 = vadd.f32 %v2695_v32, %v1595_v51  ;;  %1552 = vst.msk [vmem:[#allocation2 + $0x78] sm:$0xff] %vm329_vm3, %v1536_v50  ;;  %v1534_v57 = vadd.f32 %v1509_v53, %v1394_v52  ;;  %v1788_v32 = vld [vmem:[#allocation2 + $0x20] sm:$0xff] }
 0x1ef   : > { %v1593_v58 = vld [vmem:[#allocation2 + $0x48] sm:$0xff]  ;;  %v2704_v60 = vpop.f32.mrf.mxu1  ;;  %v2722_v61 = vpop.f32.mrf.mxu0 }
 0x1f0   : > { %1751 = vst.msk [vmem:[#allocation2 + $0x58] sm:$0xff] %vm329_vm3, %v1735_v56  ;;  %v1733_v14 = vadd.f32 %v1696_v41, %v1593_v58  ;;  %1550 = vst.msk [vmem:[#allocation2 + $0x68] sm:$0xff] %vm329_vm3, %v1534_v57  ;;  %v1926_v54 = vadd.f32 %v2704_v60, %v1786_v59  ;;  %v1791_v41 = vld [vmem:[#allocation2 + $0x38] sm:$0xff] }
 0x1f1   : > { %v1598_v62 = vld [vmem:[#allocation2 + $0x70] sm:$0xff]  ;;  %v1861_v0 = vpop.f32.mrf.mxu1  ;;  %v2061_v1 = vpop.f32.mrf.mxu0 }
 0x1f2   : > { %1749 = vst.msk [vmem:[#allocation2 + $0x48] sm:$0xff] %vm329_vm3, %v1733_v14  ;;  %v1738_v2 = vadd.f32 %v2698_v44, %v1598_v62  ;;  %1942 = vst.msk [vmem:[#allocation2 + $0x10] sm:$0xff] %vm329_vm3, %v1926_v54  ;;  %v1924_v3 = vadd.f32 %v1861_v0, %v1784_v63  ;;  %v1789_v44 = vld [vmem:[#allocation2 + $0x28] sm:$0xff] }
 0x1f3   : > { %v1596_v5 = vld [vmem:[#allocation2 + $0x60] sm:$0xff]  ;;  %v2705_v9 = vpop.f32.mrf.mxu1  ;;  %v2723_v11 = vpop.f32.mrf.mxu0 }
 0x1f4   : > { %1754 = vst.msk [vmem:[#allocation2 + $0x70] sm:$0xff] %vm329_vm3, %v1738_v2  ;;  %v1736_v12 = vadd.f32 %v1709_v22, %v1596_v5  ;;  %1940 = vst.msk [vmem:[#allocation2] sm:$0xff] %vm329_vm3, %v1924_v3  ;;  %v1927_v13 = vadd.f32 %v2705_v9, %v1787_v8  ;;  %v1794_v22 = vld [vmem:[#allocation2 + $0x50] sm:$0xff] }
 0x1f5   : > { %v1599_v15 = vld [vmem:[#allocation2 + $0x78] sm:$0xff]  ;;  %v1864_v17 = vpop.f32.mrf.mxu1  ;;  %v2064_v18 = vpop.f32.mrf.mxu0 }
 0x1f6   : > { %1752 = vst.msk [vmem:[#allocation2 + $0x60] sm:$0xff] %vm329_vm3, %v1736_v12  ;;  %v1739_v19 = vadd.f32 %v2699_v48, %v1599_v15  ;;  %1943 = vst.msk [vmem:[#allocation2 + $0x18] sm:$0xff] %vm329_vm3, %v1927_v13  ;;  %v1925_v20 = vadd.f32 %v1864_v17, %v1785_v16  ;;  %v1792_v48 = vld [vmem:[#allocation2 + $0x40] sm:$0xff] }
 0x1f7   : > { %v1597_v25 = vld [vmem:[#allocation2 + $0x68] sm:$0xff]  ;;  %v2708_v27 = vpop.f32.mrf.mxu1  ;;  %v2726_v28 = vpop.f32.mrf.mxu0  ;;  %v1795_v56 = vld [vmem:[#allocation2 + $0x58] sm:$0xff] }
 0x1f8   : > { %1755 = vst.msk [vmem:[#allocation2 + $0x78] sm:$0xff] %vm329_vm3, %v1739_v19  ;;  %v1737_v29 = vadd.f32 %v1712_v55, %v1597_v25  ;;  %1941 = vst.msk [vmem:[#allocation2 + $0x8] sm:$0xff] %vm329_vm3, %v1925_v20  ;;  %v1930_v30 = vadd.f32 %v2708_v27, %v1790_v26 }
 0x1f9   : > { %v1986_v31 = vld [vmem:[#allocation2 + $0x10] sm:$0xff]  ;;  %v1877_v33 = vpop.f32.mrf.mxu1  ;;  %v2077_v35 = vpop.f32.mrf.mxu0  ;;  %v1793_v54 = vld [vmem:[#allocation2 + $0x48] sm:$0xff] }
 0x1fa   : > { %1753 = vst.msk [vmem:[#allocation2 + $0x68] sm:$0xff] %vm329_vm3, %v1737_v29  ;;  %v2126_v36 = vadd.f32 %v2722_v61, %v1986_v31  ;;  %1946 = vst.msk [vmem:[#allocation2 + $0x30] sm:$0xff] %vm329_vm3, %v1930_v30  ;;  %v1928_v37 = vadd.f32 %v1877_v33, %v1788_v32 }
 0x1fb   : > { %v1984_v40 = vld [vmem:[#allocation2] sm:$0xff]  ;;  %v2709_v42 = vpop.f32.mrf.mxu1  ;;  %v2727_v43 = vpop.f32.mrf.mxu0  ;;  %v1798_v3 = vld [vmem:[#allocation2 + $0x70] sm:$0xff] }
 0x1fc   : > { %2142 = vst.msk [vmem:[#allocation2 + $0x10] sm:$0xff] %vm329_vm3, %v2126_v36  ;;  %v2124_v4 = vadd.f32 %v2061_v1, %v1984_v40  ;;  %1944 = vst.msk [vmem:[#allocation2 + $0x20] sm:$0xff] %vm329_vm3, %v1928_v37  ;;  %v1931_v10 = vadd.f32 %v2709_v42, %v1791_v41 }
 0x1fd   : > { %v1987_v24 = vld [vmem:[#allocation2 + $0x18] sm:$0xff]  ;;  %v1880_v45 = vpop.f32.mrf.mxu1  ;;  %v2080_v46 = vpop.f32.mrf.mxu0  ;;  %v1796_v15 = vld [vmem:[#allocation2 + $0x60] sm:$0xff] }
 0x1fe   : > { %2140 = vst.msk [vmem:[#allocation2] sm:$0xff] %vm329_vm3, %v2124_v4  ;;  %v2127_v21 = vadd.f32 %v2723_v11, %v1987_v24  ;;  %1947 = vst.msk [vmem:[#allocation2 + $0x38] sm:$0xff] %vm329_vm3, %v1931_v10  ;;  %v1929_v6 = vadd.f32 %v1880_v45, %v1789_v44 }
 0x1ff   : > { %v1985_v7 = vld [vmem:[#allocation2 + $0x8] sm:$0xff]  ;;  %v2712_v34 = vpop.f32.mrf.mxu1  ;;  %v2730_v38 = vpop.f32.mrf.mxu0  ;;  %v1799_v25 = vld [vmem:[#allocation2 + $0x78] sm:$0xff] }
 0x200   : > { %2143 = vst.msk [vmem:[#allocation2 + $0x18] sm:$0xff] %vm329_vm3, %v2127_v21  ;;  %v2125_v23 = vadd.f32 %v2064_v18, %v1985_v7  ;;  %1945 = vst.msk [vmem:[#allocation2 + $0x28] sm:$0xff] %vm329_vm3, %v1929_v6  ;;  %v1934_v39 = vadd.f32 %v2712_v34, %v1794_v22 }
 0x201   : > { %v1990_v47 = vld [vmem:[#allocation2 + $0x30] sm:$0xff]  ;;  %v1893_v49 = vpop.f32.mrf.mxu1  ;;  %v2093_v50 = vpop.f32.mrf.mxu0  ;;  %v1797_v32 = vld [vmem:[#allocation2 + $0x68] sm:$0xff] }
 0x202   : > { %2141 = vst.msk [vmem:[#allocation2 + $0x8] sm:$0xff] %vm329_vm3, %v2125_v23  ;;  %v2130_v51 = vadd.f32 %v2726_v28, %v1990_v47  ;;  %1950 = vst.msk [vmem:[#allocation2 + $0x50] sm:$0xff] %vm329_vm3, %v1934_v39  ;;  %v1932_v52 = vadd.f32 %v1893_v49, %v1792_v48 }
 0x203   : > { %v2158_v53 = vld [vmem:[#allocation2 + $0x10] sm:$0xff]  ;;  %v1988_v55 = vld [vmem:[#allocation2 + $0x20] sm:$0xff]  ;;  %v2713_v57 = vpop.f32.mrf.mxu1  ;;  %v2731_v58 = vpop.f32.mrf.mxu0 }
 0x204   : > { %2174 = vst.msk [vmem:[%s3417_s30 + $0x10] sm:$0xff] %vm329_vm3, %v2158_v53  ;;  %2146 = vst.msk [vmem:[#allocation2 + $0x30] sm:$0xff] %vm329_vm3, %v2130_v51  ;;  %v2128_v59 = vadd.f32 %v2077_v35, %v1988_v55  ;;  %v1935_v60 = vadd.f32 %v2713_v57, %v1795_v56 }
 0x205   : > { %1948 = vst.msk [vmem:[#allocation2 + $0x40] sm:$0xff] %vm329_vm3, %v1932_v52  ;;  %v2156_v61 = vld [vmem:[#allocation2] sm:$0xff]  ;;  %v1991_v14 = vld [vmem:[#allocation2 + $0x38] sm:$0xff]  ;;  %v1896_v62 = vpop.f32.mrf.mxu1  ;;  %v2096_v8 = vpop.f32.mrf.mxu0 }
 0x206   : > { %2172 = vst.msk [vmem:[%s3417_s30] sm:$0xff] %vm329_vm3, %v2156_v61  ;;  %2144 = vst.msk [vmem:[#allocation2 + $0x20] sm:$0xff] %vm329_vm3, %v2128_v59  ;;  %v2131_v63 = vadd.f32 %v2727_v43, %v1991_v14  ;;  %v1933_v0 = vadd.f32 %v1896_v62, %v1793_v54 }
 0x207   : > { %1951 = vst.msk [vmem:[#allocation2 + $0x58] sm:$0xff] %vm329_vm3, %v1935_v60  ;;  %v2159_v1 = vld [vmem:[#allocation2 + $0x18] sm:$0xff]  ;;  %v1989_v2 = vld [vmem:[#allocation2 + $0x28] sm:$0xff]  ;;  %v2716_v5 = vpop.f32.mrf.mxu1  ;;  %v2734_v27 = vpop.f32.mrf.mxu0 }
 0x208   : > { %2175 = vst.msk [vmem:[%s3417_s30 + $0x18] sm:$0xff] %vm329_vm3, %v2159_v1  ;;  %2147 = vst.msk [vmem:[#allocation2 + $0x38] sm:$0xff] %vm329_vm3, %v2131_v63  ;;  %v2129_v9 = vadd.f32 %v2080_v46, %v1989_v2  ;;  %v1938_v11 = vadd.f32 %v2716_v5, %v1798_v3 }
 0x209   : > { %1949 = vst.msk [vmem:[#allocation2 + $0x48] sm:$0xff] %vm329_vm3, %v1933_v0  ;;  %v2157_v12 = vld [vmem:[#allocation2 + $0x8] sm:$0xff]  ;;  %v1994_v13 = vld [vmem:[#allocation2 + $0x50] sm:$0xff]  ;;  %v1909_v16 = vpop.f32.mrf.mxu1  ;;  %v2109_v41 = vpop.f32.mrf.mxu0 }
 0x20a   : > { %2173 = vst.msk [vmem:[%s3417_s30 + $0x8] sm:$0xff] %vm329_vm3, %v2157_v12  ;;  %2145 = vst.msk [vmem:[#allocation2 + $0x28] sm:$0xff] %vm329_vm3, %v2129_v9  ;;  %v2134_v17 = vadd.f32 %v2730_v38, %v1994_v13  ;;  %v1936_v18 = vadd.f32 %v1909_v16, %v1796_v15 }
 0x20b   : > { %1954 = vst.msk [vmem:[#allocation2 + $0x70] sm:$0xff] %vm329_vm3, %v1938_v11  ;;  %v2162_v19 = vld [vmem:[#allocation2 + $0x30] sm:$0xff]  ;;  %v2717_v26 = vpop.f32.mrf.mxu1  ;;  %v2735_v45 = vpop.f32.mrf.mxu0 }
 0x20c   : > { %v1992_v20 = vld [vmem:[#allocation2 + $0x40] sm:$0xff]  ;;  %2178 = vst.msk [vmem:[%s3417_s30 + $0x30] sm:$0xff] %vm329_vm3, %v2162_v19  ;;  %2150 = vst.msk [vmem:[#allocation2 + $0x50] sm:$0xff] %vm329_vm3, %v2134_v17  ;;  %v1939_v29 = vadd.f32 %v2717_v26, %v1799_v25 }
 0x20d   : > { %v2132_v28 = vadd.f32 %v2093_v50, %v1992_v20  ;;  %1952 = vst.msk [vmem:[#allocation2 + $0x60] sm:$0xff] %vm329_vm3, %v1936_v18  ;;  %v2160_v30 = vld [vmem:[#allocation2 + $0x20] sm:$0xff]  ;;  %v1912_v33 = vpop.f32.mrf.mxu1  ;;  %v2112_v38 = vpop.f32.mrf.mxu0 }
 0x20e   : > { %v1995_v31 = vld [vmem:[#allocation2 + $0x58] sm:$0xff]  ;;  %2176 = vst.msk [vmem:[%s3417_s30 + $0x20] sm:$0xff] %vm329_vm3, %v2160_v30  ;;  %1955 = vst.msk [vmem:[#allocation2 + $0x78] sm:$0xff] %vm329_vm3, %v1939_v29  ;;  %v1937_v36 = vadd.f32 %v1912_v33, %v1797_v32 }
 0x20f   : > { %2148 = vst.msk [vmem:[#allocation2 + $0x40] sm:$0xff] %vm329_vm3, %v2132_v28  ;;  %v2135_v35 = vadd.f32 %v2731_v58, %v1995_v31  ;;  %v2163_v37 = vld [vmem:[#allocation2 + $0x38] sm:$0xff] }
 0x210   : > { %v1993_v40 = vld [vmem:[#allocation2 + $0x48] sm:$0xff]  ;;  %2179 = vst.msk [vmem:[%s3417_s30 + $0x38] sm:$0xff] %vm329_vm3, %v2163_v37  ;;  %1953 = vst.msk [vmem:[#allocation2 + $0x68] sm:$0xff] %vm329_vm3, %v1937_v36 }
 0x211   : > { %2151 = vst.msk [vmem:[#allocation2 + $0x58] sm:$0xff] %vm329_vm3, %v2135_v35  ;;  %v2133_v42 = vadd.f32 %v2096_v8, %v1993_v40  ;;  %v2161_v43 = vld [vmem:[#allocation2 + $0x28] sm:$0xff] }
 0x212   : > { %v1998_v4 = vld [vmem:[#allocation2 + $0x70] sm:$0xff]  ;;  %2177 = vst.msk [vmem:[%s3417_s30 + $0x28] sm:$0xff] %vm329_vm3, %v2161_v43 }
 0x213   : > { %2149 = vst.msk [vmem:[#allocation2 + $0x48] sm:$0xff] %vm329_vm3, %v2133_v42  ;;  %v2138_v10 = vadd.f32 %v2734_v27, %v1998_v4  ;;  %v2166_v24 = vld [vmem:[#allocation2 + $0x50] sm:$0xff] }
 0x214   : > { %v1996_v44 = vld [vmem:[#allocation2 + $0x60] sm:$0xff]  ;;  %2182 = vst.msk [vmem:[%s3417_s30 + $0x50] sm:$0xff] %vm329_vm3, %v2166_v24 }
 0x215   : > { %2154 = vst.msk [vmem:[#allocation2 + $0x70] sm:$0xff] %vm329_vm3, %v2138_v10  ;;  %v2136_v46 = vadd.f32 %v2109_v41, %v1996_v44  ;;  %v1999_v6 = vld [vmem:[#allocation2 + $0x78] sm:$0xff] }
 0x216   : > { %v2164_v21 = vld [vmem:[#allocation2 + $0x40] sm:$0xff]  ;;  %v2139_v7 = vadd.f32 %v2735_v45, %v1999_v6 }
 0x217   : > { %2180 = vst.msk [vmem:[%s3417_s30 + $0x40] sm:$0xff] %vm329_vm3, %v2164_v21  ;;  %2152 = vst.msk [vmem:[#allocation2 + $0x60] sm:$0xff] %vm329_vm3, %v2136_v46  ;;  %v1997_v34 = vld [vmem:[#allocation2 + $0x68] sm:$0xff] }
 0x218   : > { %v2167_v22 = vld [vmem:[#allocation2 + $0x58] sm:$0xff]  ;;  %2155 = vst.msk [vmem:[#allocation2 + $0x78] sm:$0xff] %vm329_vm3, %v2139_v7  ;;  %v2137_v23 = vadd.f32 %v2112_v38, %v1997_v34 }
 0x219   : > { %2183 = vst.msk [vmem:[%s3417_s30 + $0x58] sm:$0xff] %vm329_vm3, %v2167_v22 }
 0x21a   : > { %v2165_v39 = vld [vmem:[#allocation2 + $0x48] sm:$0xff]  ;;  %2153 = vst.msk [vmem:[#allocation2 + $0x68] sm:$0xff] %vm329_vm3, %v2137_v23 }
 0x21b   : > { %2181 = vst.msk [vmem:[%s3417_s30 + $0x48] sm:$0xff] %vm329_vm3, %v2165_v39 }
 0x21c   : > { %v2170_v47 = vld [vmem:[#allocation2 + $0x70] sm:$0xff] }
 0x21d   : > { %2186 = vst.msk [vmem:[%s3417_s30 + $0x70] sm:$0xff] %vm329_vm3, %v2170_v47 }
 0x21e   : > { %v2168_v48 = vld [vmem:[#allocation2 + $0x60] sm:$0xff] }
 0x21f   : > { %2184 = vst.msk [vmem:[%s3417_s30 + $0x60] sm:$0xff] %vm329_vm3, %v2168_v48  ;;  %v2171_v49 = vld [vmem:[#allocation2 + $0x78] sm:$0xff] }
 0x220   : > { %2187 = vst.msk [vmem:[%s3417_s30 + $0x78] sm:$0xff] %vm329_vm3, %v2171_v49 }
 0x221   : > { %v2169_v50 = vld [vmem:[#allocation2 + $0x68] sm:$0xff] }
 0x222   : > { %2185 = vst.msk [vmem:[%s3417_s30 + $0x68] sm:$0xff] %vm329_vm3, %v2169_v50 }
 0x223 PF: > { %s13_s16 = sadd.s32 1, %s2830_s16   ;;  %s3492_s12 = smov %s2822_s14 }
 0x224   : > { %p10_p7 = scmp.ge.s32.totalorder %s13_s16, 6   ;;  %s3493_s13 = smov %s2826_s15 }
 0x225   : > { %s3494_s14 = smov %s3497_s17  ;;  %s3495_s15 = smov %s3501_s18 }
 0x226   :  { %12 = sbr.rel (!%p10_p7) target bundleno = 3 (0x3), region = 76 }

</bundles_post_ra>
